<compile_context>
chip_gen: v6e
topology: v6e:2x2x1
jax: 0.10.0
libtpu: 0.0.40
codegen_flags: <defaults>
</compile_context>

<pallas_src>
import numpy as np
import jax
import jax.numpy as jnp
from jax.experimental import pallas as pl
from jax.experimental.pallas import tpu as pltpu

# ---------------- model sizes (args) ----------------
EMBED = 32      # args.embed_size == args.hidden_size == args.rnn_size
HIDDEN = 32
OUTPUT = 16     # args.output_size
VOCAB = 50      # args.vocab_size
SPLIT = 20      # args.split_num  (value table has SPLIT+1 rows)
B, V, C, K = 2, 4, 5, 3            # batch, visits, codes/visit, neighbours/visit

NV = V * B                          # rows per slab (visit-major, batch-minor) = 8
NX = C * NV                         # main-path rows = 40
NK = K * NV                         # neighbour rows = 24
N_EMB_IDX = NX + 2 * NK             # 88  vocab-table lookups
N_VAL_IDX = NX + 4 * NK             # 136 value-table lookups
N_IDX = N_EMB_IDX + N_VAL_IDX       # 224 total index rows
EMB_PAD = 64                        # vocab table padded to 64 rows
VAL_PAD = 32                        # value table padded to 32 rows
LANES = 128

# ---------------- packed weight-slab row offsets (all multiples of 8) ----------------
OFF_EMB   = 0
OFF_VAL   = OFF_EMB + EMB_PAD          # 64
OFF_VM    = OFF_VAL + VAL_PAD          # 96   value_mapping (2E x E), top=emb, bot=val
OFF_PRE1  = OFF_VM + 2 * EMBED         # 160  pre_embedding layer1 (2E x E)
OFF_PRE2  = OFF_PRE1 + 2 * EMBED       # 224  pre_embedding layer2 (E x E)
OFF_POST1 = OFF_PRE2 + EMBED           # 256
OFF_POST2 = OFF_POST1 + 2 * EMBED      # 320
OFF_WIH   = OFF_POST2 + EMBED          # 352  LSTM W_ih (E x 4H)
OFF_WHH   = OFF_WIH + EMBED            # 384  LSTM W_hh (H x 4H)
OFF_OT1   = OFF_WHH + HIDDEN           # 416  [out_w1 | tah_w1] (H x 2H)
OFF_OT2   = OFF_OT1 + HIDDEN           # 448  block-diag [out_w2, 0; 0, tah_w2] (2H x 2H)
OFF_TAV1  = OFF_OT2 + 2 * HIDDEN       # 512
OFF_TAV2  = OFF_TAV1 + HIDDEN          # 544
OFF_VALW1 = OFF_TAV2 + HIDDEN          # 576
OFF_VALW2 = OFF_VALW1 + HIDDEN         # 608  (H x OUTPUT)
W_ROWS    = OFF_VALW2 + HIDDEN         # 640

# ---------------- bias-slab rows ----------------
BR_VM, BR_PRE1, BR_PRE2, BR_POST1, BR_POST2, BR_LSTM = 0, 1, 2, 3, 4, 5
BR_OT1, BR_OT2, BR_TAV1, BR_TAV2, BR_VAL1, BR_VAL2 = 6, 7, 8, 9, 10, 11
B_ROWS = 16


# ---------------- fused forward kernel ----------------
def _tame_forward_kernel(idx_ref, w_ref, b_ref, o_ref):
  f32, bf16 = jnp.float32, jnp.bfloat16
  H = HIDDEN

  def mm(a, b):
    # Single-pass bf16 MXU matmul with f32 accumulation.
    return jnp.dot(a.astype(bf16), b.astype(bf16), preferred_element_type=f32)

  def w(off, rows, cols):
    return w_ref[off:off + rows, 0:cols]

  def bias(row, cols):
    return b_ref[row:row + 1, 0:cols]

  # ---- embedding lookups: one-hot @ VMEM-resident table (no XLA gathers) ----
  emb_idx = idx_ref[0:N_EMB_IDX, :]            # (88, 1)  [x_index|pre_idx|post_idx]
  val_idx = idx_ref[N_EMB_IDX:N_IDX, :]        # (136,1)  [x_val|pre_val|post_val|pre_t|post_t]

  emb_oh = (jax.lax.broadcasted_iota(jnp.int32, (N_EMB_IDX, EMB_PAD), 1)
            == emb_idx).astype(f32)
  val_oh = (jax.lax.broadcasted_iota(jnp.int32, (N_VAL_IDX, VAL_PAD), 1)
            == val_idx).astype(f32)
  emb_all = mm(emb_oh, w(OFF_EMB, EMB_PAD, EMBED))            # (88, 32)
  val_all = mm(val_oh, w(OFF_VAL, VAL_PAD, EMBED))            # (136, 32)

  # ---- shared value_mapping over main/pre/post rows (concat folded into split W) ----
  vm_all = jnp.maximum(
      mm(emb_all, w(OFF_VM, EMBED, EMBED))
      + mm(val_all[0:N_EMB_IDX], w(OFF_VM + EMBED, EMBED, EMBED))
      + bias(BR_VM, EMBED), 0.0)                              # (88, 32)

  xm      = vm_all[0:NX]                       # rows = c*NV + v*B + b
  vm_pre  = vm_all[NX:NX + NK]                 # rows = k*NV + v*B + b
  vm_post = vm_all[NX + NK:NX + 2 * NK]
  pre_t   = val_all[N_EMB_IDX:N_EMB_IDX + NK]
  post_t  = val_all[N_EMB_IDX + NK:N_EMB_IDX + 2 * NK]

  # ---- visit pooling: max over the C contiguous 8-row code slabs ----
  pooled = xm[0:NV]
  for c in range(1, C):
    pooled = jnp.maximum(pooled, xm[c * NV:(c + 1) * NV])     # (8, 32)

  # ---- LSTM: input projection hoisted; recurrence fully unrolled ----
  gates_x = mm(pooled, w(OFF_WIH, EMBED, 4 * H)) + bias(BR_LSTM, 4 * H)  # (8, 128)
  whh = w(OFF_WHH, H, 4 * H)                                             # (32, 128) bf16

  h = jnp.zeros((B, H), f32)
  c_state = jnp.zeros((B, H), f32)
  hs = []
  for v in range(V):
    g = gates_x[v * B:(v + 1) * B, :]                 # static 2-row sublane slice
    if v > 0:
      g = g + mm(h, whh)                              # only dependent MXU op per step
    sg = jax.nn.sigmoid(g)                            # one EUP pass over all 4 gates
    i_g = sg[:, 0:H]
    f_g = sg[:, H:2 * H]
    o_g = sg[:, 3 * H:4 * H]
    g_g = jnp.tanh(g[:, 2 * H:3 * H])                 # one tanh on the g-gate lanes
    c_state = f_g * c_state + i_g * g_g
    h = o_g * jnp.tanh(c_state)
    hs.append(h)
  lstm_out = jnp.concatenate(hs, axis=0)              # (8, 32), rows v*B + b

  # ---- output head + tah_mapping: merged (shared-input) matmul pair ----
  h1 = jnp.maximum(mm(lstm_out, w(OFF_OT1, H, 2 * H)) + bias(BR_OT1, 2 * H), 0.0)
  y = mm(h1, w(OFF_OT2, 2 * H, 2 * H)) + bias(BR_OT2, 2 * H)            # (8, 64)
  out = y[:, 0:H]                      # output(lstm_out)
  wh = y[:, H:2 * H]                   # tah_mapping(lstm_out)

  # ---- pre / post neighbour embeddings (feature concat folded into split W) ----
  def pp_mlp(vm_x, t_x, off1, br1, off2, br2):
    hh = jnp.maximum(mm(vm_x, w(off1, EMBED, EMBED))
                     + mm(t_x, w(off1 + EMBED, EMBED, EMBED))
                     + bias(br1, EMBED), 0.0)
    return jnp.maximum(mm(hh, w(off2, EMBED, EMBED)) + bias(br2, EMBED), 0.0)

  pre_x = pp_mlp(vm_pre, pre_t, OFF_PRE1, BR_PRE1, OFF_PRE2, BR_PRE2)    # (24, 32)
  post_x = pp_mlp(vm_post, post_t, OFF_POST1, BR_POST1, OFF_POST2, BR_POST2)
  pp = jnp.concatenate([pre_x, post_x], axis=0)                          # (48, 32)

  # ---- tav_mapping: once over the whole neighbour slab ----
  th = jnp.maximum(mm(pp, w(OFF_TAV1, H, H)) + bias(BR_TAV1, H), 0.0)
  wv = mm(th, w(OFF_TAV2, H, H)) + bias(BR_TAV2, H)                      # (48, 32)

  # ---- time-aware attention: softmax over the 2K neighbour slabs ----
  beta = wv + jnp.concatenate([wh] * (2 * K), axis=0)                    # (48, 32)
  m = beta[0:NV]
  for k in range(1, 2 * K):
    m = jnp.maximum(m, beta[k * NV:(k + 1) * NV])
  e = jnp.exp(beta - jnp.concatenate([m] * (2 * K), axis=0))             # one EUP pass
  den = e[0:NV]
  num = e[0:NV] * pp[0:NV]
  for k in range(1, 2 * K):
    e_k = e[k * NV:(k + 1) * NV]
    den = den + e_k
    num = num + e_k * pp[k * NV:(k + 1) * NV]
  att = num * pl.reciprocal(den, approx=True)                            # (8, 32)

  # ---- residual + value head ----
  out = out + att
  hv = jnp.maximum(mm(out, w(OFF_VALW1, H, H)) + bias(BR_VAL1, H), 0.0)
  o_ref[...] = mm(hv, w(OFF_VALW2, H, OUTPUT)) + bias(BR_VAL2, OUTPUT)   # (8, 16)


# ---------------- one-time parameter packing (hoisted out of forward) ----------------
def prepare_params(p):
  """Pack every table / weight / bias into two VMEM-friendly slabs (runs once)."""
  W = np.zeros((W_ROWS, LANES), np.float32)

  def put(off, a):
    a = np.asarray(a, np.float32)
    W[off:off + a.shape[0], 0:a.shape[1]] = a

  put(OFF_EMB, p['emb'])
  put(OFF_VAL, p['value_emb'])
  put(OFF_VM, p['vm_w'])
  put(OFF_PRE1, p['pre_w1'])
  put(OFF_PRE2, p['pre_w2'])
  put(OFF_POST1, p['post_w1'])
  put(OFF_POST2, p['post_w2'])
  put(OFF_WIH, p['lstm_wih'])
  put(OFF_WHH, p['lstm_whh'])
  put(OFF_OT1, np.concatenate([np.asarray(p['out_w1']), np.asarray(p['tah_w1'])], axis=1))
  ot2 = np.zeros((2 * HIDDEN, 2 * HIDDEN), np.float32)
  ot2[:HIDDEN, :HIDDEN] = np.asarray(p['out_w2'])
  ot2[HIDDEN:, HIDDEN:] = np.asarray(p['tah_w2'])
  put(OFF_OT2, ot2)
  put(OFF_TAV1, p['tav_w1'])
  put(OFF_TAV2, p['tav_w2'])
  put(OFF_VALW1, p['val_w1'])
  put(OFF_VALW2, p['val_w2'])

  Bm = np.zeros((B_ROWS, LANES), np.float32)

  def putb(row, a):
    a = np.asarray(a, np.float32).reshape(-1)
    Bm[row, 0:a.shape[0]] = a

  putb(BR_VM, p['vm_b'])
  putb(BR_PRE1, p['pre_b1'])
  putb(BR_PRE2, p['pre_b2'])
  putb(BR_POST1, p['post_b1'])
  putb(BR_POST2, p['post_b2'])
  putb(BR_LSTM, p['lstm_b'])
  putb(BR_OT1, np.concatenate([np.asarray(p['out_b1']), np.asarray(p['tah_b1'])]))
  putb(BR_OT2, np.concatenate([np.asarray(p['out_b2']), np.asarray(p['tah_b2'])]))
  putb(BR_TAV1, p['tav_b1'])
  putb(BR_TAV2, p['tav_b2'])
  putb(BR_VAL1, p['val_b1'])
  putb(BR_VAL2, p['val_b2'])

  return {'w': jnp.asarray(W, jnp.bfloat16), 'b': jnp.asarray(Bm, jnp.float32)}


# ---------------- wrapper ----------------
def forward(packed, x_index, x_value, neib):
  (pre_idx, pre_val), pre_t_idx, (post_idx, post_val), post_t_idx = neib

  def rows(a):
    # (B, V, last) -> (last*V*B, 1): slot-major, then visit, then batch.
    return jnp.transpose(a, (2, 1, 0)).reshape(-1, 1)

  idx = jnp.concatenate(
      [rows(x_index), rows(pre_idx), rows(post_idx),
       rows(x_value), rows(pre_val), rows(post_val),
       rows(pre_t_idx), rows(post_t_idx)], axis=0).astype(jnp.int32)   # (224, 1)

  out = pl.pallas_call(
      _tame_forward_kernel,
      out_shape=jax.ShapeDtypeStruct((NV, OUTPUT), jnp.float32),
      compiler_params=pltpu.CompilerParams(vmem_limit_bytes=4 * 1024 * 1024),
  )(idx, packed['w'], packed['b'])

  # kernel rows are ordered v*B + b -> back to (B, V, OUTPUT)
  return jnp.transpose(out.reshape(V, B, OUTPUT), (1, 0, 2))


# ---------------- parameters ----------------
def value_embedding_data(d, split):
  vec = np.array([np.arange(split) * i for i in range(d // 2)],
                 dtype=np.float32).transpose()
  vec = vec / vec.max()
  emb = np.concatenate((np.sin(vec), np.cos(vec)), 1)
  emb[0, :d] = 0
  return jnp.asarray(emb, dtype=jnp.float32)


def _linear_init(key, din, dout):
  kw, kb = jax.random.split(key)
  bound = 1.0 / np.sqrt(din)
  w = jax.random.uniform(kw, (din, dout), jnp.float32, -bound, bound)
  b = jax.random.uniform(kb, (dout,), jnp.float32, -bound, bound)
  return w, b


def init_params(key):
  ks = jax.random.split(key, 18)
  p = {}
  p['emb'] = jax.random.normal(ks[0], (VOCAB, EMBED), jnp.float32)        # nn.Embedding
  p['value_emb'] = value_embedding_data(EMBED, SPLIT + 1)                 # frozen table
  p['vm_w'], p['vm_b'] = _linear_init(ks[1], 2 * EMBED, EMBED)            # value_mapping
  p['pre_w1'], p['pre_b1'] = _linear_init(ks[2], 2 * EMBED, EMBED)        # pre_embedding
  p['pre_w2'], p['pre_b2'] = _linear_init(ks[3], EMBED, EMBED)
  p['post_w1'], p['post_b1'] = _linear_init(ks[4], 2 * EMBED, EMBED)      # post_embedding
  p['post_w2'], p['post_b2'] = _linear_init(ks[5], EMBED, EMBED)
  bound = 1.0 / np.sqrt(HIDDEN)
  p['lstm_wih'] = jax.random.uniform(ks[6], (EMBED, 4 * HIDDEN), jnp.float32, -bound, bound)
  p['lstm_whh'] = jax.random.uniform(ks[7], (HIDDEN, 4 * HIDDEN), jnp.float32, -bound, bound)
  p['lstm_b'] = (jax.random.uniform(ks[8], (4 * HIDDEN,), jnp.float32, -bound, bound)
                 + jax.random.uniform(ks[9], (4 * HIDDEN,), jnp.float32, -bound, bound))
  p['tah_w1'], p['tah_b1'] = _linear_init(ks[10], HIDDEN, HIDDEN)         # tah_mapping
  p['tah_w2'], p['tah_b2'] = _linear_init(ks[11], HIDDEN, HIDDEN)
  p['tav_w1'], p['tav_b1'] = _linear_init(ks[12], HIDDEN, HIDDEN)         # tav_mapping
  p['tav_w2'], p['tav_b2'] = _linear_init(ks[13], HIDDEN, HIDDEN)
  p['out_w1'], p['out_b1'] = _linear_init(ks[14], HIDDEN, HIDDEN)         # output
  p['out_w2'], p['out_b2'] = _linear_init(ks[15], HIDDEN, HIDDEN)
  p['val_w1'], p['val_b1'] = _linear_init(ks[16], HIDDEN, HIDDEN)         # value
  p['val_w2'], p['val_b2'] = _linear_init(ks[17], HIDDEN, OUTPUT)
  return p


# ---------------- pure-JAX reference (eval mode, Precision.HIGHEST) ----------------
def reference_forward(p, x_index, x_value, neib):
  hp = jax.lax.Precision.HIGHEST

  def dense(x, w, b):
    return jnp.dot(x, w, precision=hp) + b

  def mlp(x, w1, b1, w2, b2, final_relu=False):
    h = jax.nn.relu(dense(x, w1, b1))
    y = dense(h, w2, b2)
    return jax.nn.relu(y) if final_relu else y

  def value_order_embedding(idx, val):
    xi = p['emb'][idx]
    xv = p['value_emb'][val]
    return jax.nn.relu(dense(jnp.concatenate([xi, xv], axis=-1), p['vm_w'], p['vm_b']))

  x = value_order_embedding(x_index, x_value)            # (B,V,C,E)
  x = jnp.max(x, axis=2)                                 # visit pooling -> (B,V,E)

  def lstm_step(carry, x_t):
    h, c = carry
    g = (jnp.dot(x_t, p['lstm_wih'], precision=hp)
         + jnp.dot(h, p['lstm_whh'], precision=hp) + p['lstm_b'])
    i = jax.nn.sigmoid(g[:, :HIDDEN])
    f = jax.nn.sigmoid(g[:, HIDDEN:2 * HIDDEN])
    gg = jnp.tanh(g[:, 2 * HIDDEN:3 * HIDDEN])
    o = jax.nn.sigmoid(g[:, 3 * HIDDEN:])
    c = f * c + i * gg
    h = o * jnp.tanh(c)
    return (h, c), h

  h0 = jnp.zeros((x.shape[0], HIDDEN), jnp.float32)
  _, hs = jax.lax.scan(lstm_step, (h0, h0), jnp.transpose(x, (1, 0, 2)))
  lstm_out = jnp.transpose(hs, (1, 0, 2))                # (B,V,H)

  out = mlp(lstm_out, p['out_w1'], p['out_b1'], p['out_w2'], p['out_b2'])

  (pre_idx, pre_val), pre_t_idx, (post_idx, post_val), post_t_idx = neib
  pre_vm = value_order_embedding(pre_idx, pre_val)       # (B,V,K,E)
  post_vm = value_order_embedding(post_idx, post_val)
  pre_t = p['value_emb'][pre_t_idx]
  post_t = p['value_emb'][post_t_idx]
  pre_x = mlp(jnp.concatenate([pre_vm, pre_t], axis=-1),
              p['pre_w1'], p['pre_b1'], p['pre_w2'], p['pre_b2'], final_relu=True)
  post_x = mlp(jnp.concatenate([post_vm, post_t], axis=-1),
               p['post_w1'], p['post_b1'], p['post_w2'], p['post_b2'], final_relu=True)
  pp = jnp.concatenate([pre_x, post_x], axis=2)          # (B,V,2K,E)

  wh = mlp(lstm_out, p['tah_w1'], p['tah_b1'], p['tah_w2'], p['tah_b2'])
  wv = mlp(pp, p['tav_w1'], p['tav_b1'], p['tav_w2'], p['tav_b2'])
  beta = wv + wh[:, :, None, :]
  alpha = jax.nn.softmax(beta, axis=2)
  att = jnp.sum(alpha * pp, axis=2)                      # (B,V,H)

  out = out + att
  return mlp(out, p['val_w1'], p['val_b1'], p['val_w2'], p['val_b2'])


if __name__ == "__main__":
  key = jax.random.PRNGKey(0)
  kp, k1, k2, k3, k4, k5, k6, k7, k8 = jax.random.split(key, 9)
  params = init_params(kp)
  packed = prepare_params(params)        # one-time weight packing (hoisted)

  x_index = jax.random.randint(k1, (B, V, C), 0, VOCAB, dtype=jnp.int32)
  x_value = jax.random.randint(k2, (B, V, C), 0, SPLIT + 1, dtype=jnp.int32)
  pre_idx = jax.random.randint(k3, (B, V, K), 0, VOCAB, dtype=jnp.int32)
  pre_val = jax.random.randint(k4, (B, V, K), 0, SPLIT + 1, dtype=jnp.int32)
  post_idx = jax.random.randint(k5, (B, V, K), 0, VOCAB, dtype=jnp.int32)
  post_val = jax.random.randint(k6, (B, V, K), 0, SPLIT + 1, dtype=jnp.int32)
  pre_t = jax.random.randint(k7, (B, V, K), 0, SPLIT + 1, dtype=jnp.int32)
  post_t = jax.random.randint(k8, (B, V, K), 0, SPLIT + 1, dtype=jnp.int32)
  neib = ((pre_idx, pre_val), pre_t, (post_idx, post_val), post_t)

  value = jax.jit(forward)(packed, x_index, x_value, neib)
  value = jax.block_until_ready(value)
  assert value.shape == (B, V, OUTPUT)
  assert bool(jnp.all(jnp.isfinite(value)))

  ref = jax.jit(reference_forward)(params, x_index, x_value, neib)
  ref = jax.block_until_ready(ref)
  err = float(jnp.max(jnp.abs(value - ref)))
  # Tolerance accounts for single-pass bf16 MXU operands (per perf review) vs the
  # Precision.HIGHEST f32 reference (~8 fewer mantissa bits per matmul operand).
  assert err < 5e-2, f"mismatch vs pure-JAX reference: max abs err {err}"

  print("KERNEL_OK")
</pallas_src>

<mosaic_0001>
module attributes {stable_mosaic.version = 11 : i64} {
  func.func @_tame_forward_kernel(%arg0: memref<224x1xi32, #tpu.memory_space<vmem>>, %arg1: memref<640x128xbf16, #tpu.memory_space<vmem>>, %arg2: memref<16x128xf32, #tpu.memory_space<vmem>>, %arg3: memref<8x16xf32, #tpu.memory_space<vmem>>) attributes {dimension_semantics = [], scalar_prefetch = 0 : i64, scratch_operands = 0 : i64, tpu.core_type = #tpu.core_type<tc>} {
    %c0 = arith.constant 0 : index
    %c0_0 = arith.constant 0 : index
    %0 = vector.load %arg0[%c0, %c0_0] : memref<224x1xi32, #tpu.memory_space<vmem>>, vector<88x1xi32>
    %c88 = arith.constant 88 : index
    %c0_1 = arith.constant 0 : index
    %1 = vector.load %arg0[%c88, %c0_1] : memref<224x1xi32, #tpu.memory_space<vmem>>, vector<136x1xi32>
    %2 = tpu.iota {dimensions = array<i32: 1>} : vector<88x64xi32>
    %3 = vector.broadcast %0 : vector<88x1xi32> to vector<88x64xi32>
    %4 = arith.cmpi eq, %2, %3 : vector<88x64xi32>
    %5 = arith.extui %4 : vector<88x64xi1> to vector<88x64xi32>
    %6 = arith.sitofp %5 : vector<88x64xi32> to vector<88x64xf32>
    %7 = tpu.iota {dimensions = array<i32: 1>} : vector<136x32xi32>
    %8 = vector.broadcast %1 : vector<136x1xi32> to vector<136x32xi32>
    %9 = arith.cmpi eq, %7, %8 : vector<136x32xi32>
    %10 = arith.extui %9 : vector<136x32xi1> to vector<136x32xi32>
    %11 = arith.sitofp %10 : vector<136x32xi32> to vector<136x32xf32>
    %c0_2 = arith.constant 0 : index
    %c0_3 = arith.constant 0 : index
    %12 = vector.load %arg1[%c0_2, %c0_3] : memref<640x128xbf16, #tpu.memory_space<vmem>>, vector<64x32xbf16>
    %13 = arith.truncf %6 : vector<88x64xf32> to vector<88x64xbf16>
    %cst = arith.constant dense<0.000000e+00> : vector<88x32xf32>
    %14 = tpu.matmul %13, %12, %cst {dimension_numbers = #tpu.dot_dimension_numbers<[1], [0], [0], [1], [0, 0, 1, 1], [], []>} : vector<88x64xbf16>, vector<64x32xbf16>, vector<88x32xf32> -> vector<88x32xf32>
    %c64 = arith.constant 64 : index
    %c0_4 = arith.constant 0 : index
    %15 = vector.load %arg1[%c64, %c0_4] : memref<640x128xbf16, #tpu.memory_space<vmem>>, vector<32x32xbf16>
    %16 = arith.truncf %11 : vector<136x32xf32> to vector<136x32xbf16>
    %cst_5 = arith.constant dense<0.000000e+00> : vector<136x32xf32>
    %17 = tpu.matmul %16, %15, %cst_5 {dimension_numbers = #tpu.dot_dimension_numbers<[1], [0], [0], [1], [0, 0, 1, 1], [], []>} : vector<136x32xbf16>, vector<32x32xbf16>, vector<136x32xf32> -> vector<136x32xf32>
    %c96 = arith.constant 96 : index
    %c0_6 = arith.constant 0 : index
    %18 = vector.load %arg1[%c96, %c0_6] : memref<640x128xbf16, #tpu.memory_space<vmem>>, vector<32x32xbf16>
    %19 = arith.truncf %14 : vector<88x32xf32> to vector<88x32xbf16>
    %cst_7 = arith.constant dense<0.000000e+00> : vector<88x32xf32>
    %20 = tpu.matmul %19, %18, %cst_7 {dimension_numbers = #tpu.dot_dimension_numbers<[1], [0], [0], [1], [0, 0, 1, 1], [], []>} : vector<88x32xbf16>, vector<32x32xbf16>, vector<88x32xf32> -> vector<88x32xf32>
    %21 = vector.extract_strided_slice %17 {offsets = [0, 0], sizes = [88, 32], strides = [1, 1]} : vector<136x32xf32> to vector<88x32xf32>
    %c128 = arith.constant 128 : index
    %c0_8 = arith.constant 0 : index
    %22 = vector.load %arg1[%c128, %c0_8] : memref<640x128xbf16, #tpu.memory_space<vmem>>, vector<32x32xbf16>
    %23 = arith.truncf %21 : vector<88x32xf32> to vector<88x32xbf16>
    %cst_9 = arith.constant dense<0.000000e+00> : vector<88x32xf32>
    %24 = tpu.matmul %23, %22, %cst_9 {dimension_numbers = #tpu.dot_dimension_numbers<[1], [0], [0], [1], [0, 0, 1, 1], [], []>} : vector<88x32xbf16>, vector<32x32xbf16>, vector<88x32xf32> -> vector<88x32xf32>
    %25 = arith.addf %20, %24 : vector<88x32xf32>
    %c0_10 = arith.constant 0 : index
    %c0_11 = arith.constant 0 : index
    %26 = vector.load %arg2[%c0_10, %c0_11] : memref<16x128xf32, #tpu.memory_space<vmem>>, vector<1x32xf32>
    %27 = vector.broadcast %26 : vector<1x32xf32> to vector<88x32xf32>
    %28 = arith.addf %25, %27 : vector<88x32xf32>
    %cst_12 = arith.constant 0.000000e+00 : f32
    %29 = vector.broadcast %cst_12 : f32 to vector<88x32xf32>
    %30 = arith.maximumf %28, %29 : vector<88x32xf32>
    %31 = vector.extract_strided_slice %30 {offsets = [0, 0], sizes = [40, 32], strides = [1, 1]} : vector<88x32xf32> to vector<40x32xf32>
    %32 = vector.extract_strided_slice %30 {offsets = [40, 0], sizes = [24, 32], strides = [1, 1]} : vector<88x32xf32> to vector<24x32xf32>
    %33 = vector.extract_strided_slice %30 {offsets = [64, 0], sizes = [24, 32], strides = [1, 1]} : vector<88x32xf32> to vector<24x32xf32>
    %34 = vector.extract_strided_slice %17 {offsets = [88, 0], sizes = [24, 32], strides = [1, 1]} : vector<136x32xf32> to vector<24x32xf32>
    %35 = vector.extract_strided_slice %17 {offsets = [112, 0], sizes = [24, 32], strides = [1, 1]} : vector<136x32xf32> to vector<24x32xf32>
    %36 = vector.extract_strided_slice %31 {offsets = [0, 0], sizes = [8, 32], strides = [1, 1]} : vector<40x32xf32> to vector<8x32xf32>
    %37 = vector.extract_strided_slice %31 {offsets = [8, 0], sizes = [8, 32], strides = [1, 1]} : vector<40x32xf32> to vector<8x32xf32>
    %38 = arith.maximumf %36, %37 : vector<8x32xf32>
    %39 = vector.extract_strided_slice %31 {offsets = [16, 0], sizes = [8, 32], strides = [1, 1]} : vector<40x32xf32> to vector<8x32xf32>
    %40 = arith.maximumf %38, %39 : vector<8x32xf32>
    %41 = vector.extract_strided_slice %31 {offsets = [24, 0], sizes = [8, 32], strides = [1, 1]} : vector<40x32xf32> to vector<8x32xf32>
    %42 = arith.maximumf %40, %41 : vector<8x32xf32>
    %43 = vector.extract_strided_slice %31 {offsets = [32, 0], sizes = [8, 32], strides = [1, 1]} : vector<40x32xf32> to vector<8x32xf32>
    %44 = arith.maximumf %42, %43 : vector<8x32xf32>
    %c352 = arith.constant 352 : index
    %c0_13 = arith.constant 0 : index
    %45 = vector.load %arg1[%c352, %c0_13] : memref<640x128xbf16, #tpu.memory_space<vmem>>, vector<32x128xbf16>
    %46 = arith.truncf %44 : vector<8x32xf32> to vector<8x32xbf16>
    %cst_14 = arith.constant dense<0.000000e+00> : vector<8x128xf32>
    %47 = tpu.matmul %46, %45, %cst_14 {dimension_numbers = #tpu.dot_dimension_numbers<[1], [0], [0], [1], [0, 0, 1, 1], [], []>} : vector<8x32xbf16>, vector<32x128xbf16>, vector<8x128xf32> -> vector<8x128xf32>
    %c5 = arith.constant 5 : index
    %c0_15 = arith.constant 0 : index
    %48 = vector.load %arg2[%c5, %c0_15] : memref<16x128xf32, #tpu.memory_space<vmem>>, vector<1x128xf32>
    %49 = vector.broadcast %48 : vector<1x128xf32> to vector<8x128xf32>
    %50 = arith.addf %47, %49 : vector<8x128xf32>
    %c384 = arith.constant 384 : index
    %c0_16 = arith.constant 0 : index
    %51 = vector.load %arg1[%c384, %c0_16] : memref<640x128xbf16, #tpu.memory_space<vmem>>, vector<32x128xbf16>
    %cst_17 = arith.constant 0.000000e+00 : f32
    %52 = vector.broadcast %cst_17 : f32 to vector<2x32xf32>
    %53 = vector.extract_strided_slice %50 {offsets = [0, 0], sizes = [2, 128], strides = [1, 1]} : vector<8x128xf32> to vector<2x128xf32>
    %54 = arith.negf %53 : vector<2x128xf32>
    %55 = math.exp %54 : vector<2x128xf32>
    %cst_18 = arith.constant 1.000000e+00 : f32
    %56 = vector.broadcast %cst_18 : f32 to vector<2x128xf32>
    %57 = arith.addf %56, %55 : vector<2x128xf32>
    %58 = arith.divf %56, %57 : vector<2x128xf32>
    %59 = vector.extract_strided_slice %58 {offsets = [0, 0], sizes = [2, 32], strides = [1, 1]} : vector<2x128xf32> to vector<2x32xf32>
    %60 = vector.extract_strided_slice %58 {offsets = [0, 32], sizes = [2, 32], strides = [1, 1]} : vector<2x128xf32> to vector<2x32xf32>
    %61 = vector.extract_strided_slice %58 {offsets = [0, 96], sizes = [2, 32], strides = [1, 1]} : vector<2x128xf32> to vector<2x32xf32>
    %62 = vector.extract_strided_slice %53 {offsets = [0, 64], sizes = [2, 32], strides = [1, 1]} : vector<2x128xf32> to vector<2x32xf32>
    %63 = math.tanh %62 : vector<2x32xf32>
    %64 = arith.mulf %60, %52 : vector<2x32xf32>
    %65 = arith.mulf %59, %63 : vector<2x32xf32>
    %66 = arith.addf %64, %65 : vector<2x32xf32>
    %67 = math.tanh %66 : vector<2x32xf32>
    %68 = arith.mulf %61, %67 : vector<2x32xf32>
    %69 = vector.extract_strided_slice %50 {offsets = [2, 0], sizes = [2, 128], strides = [1, 1]} : vector<8x128xf32> to vector<2x128xf32>
    %70 = arith.truncf %68 : vector<2x32xf32> to vector<2x32xbf16>
    %cst_19 = arith.constant dense<0.000000e+00> : vector<2x128xf32>
    %71 = tpu.matmul %70, %51, %cst_19 {dimension_numbers = #tpu.dot_dimension_numbers<[1], [0], [0], [1], [0, 0, 1, 1], [], []>} : vector<2x32xbf16>, vector<32x128xbf16>, vector<2x128xf32> -> vector<2x128xf32>
    %72 = arith.addf %69, %71 : vector<2x128xf32>
    %73 = arith.negf %72 : vector<2x128xf32>
    %74 = math.exp %73 : vector<2x128xf32>
    %cst_20 = arith.constant 1.000000e+00 : f32
    %75 = vector.broadcast %cst_20 : f32 to vector<2x128xf32>
    %76 = arith.addf %75, %74 : vector<2x128xf32>
    %77 = arith.divf %75, %76 : vector<2x128xf32>
    %78 = vector.extract_strided_slice %77 {offsets = [0, 0], sizes = [2, 32], strides = [1, 1]} : vector<2x128xf32> to vector<2x32xf32>
    %79 = vector.extract_strided_slice %77 {offsets = [0, 32], sizes = [2, 32], strides = [1, 1]} : vector<2x128xf32> to vector<2x32xf32>
    %80 = vector.extract_strided_slice %77 {offsets = [0, 96], sizes = [2, 32], strides = [1, 1]} : vector<2x128xf32> to vector<2x32xf32>
    %81 = vector.extract_strided_slice %72 {offsets = [0, 64], sizes = [2, 32], strides = [1, 1]} : vector<2x128xf32> to vector<2x32xf32>
    %82 = math.tanh %81 : vector<2x32xf32>
    %83 = arith.mulf %79, %66 : vector<2x32xf32>
    %84 = arith.mulf %78, %82 : vector<2x32xf32>
    %85 = arith.addf %83, %84 : vector<2x32xf32>
    %86 = math.tanh %85 : vector<2x32xf32>
    %87 = arith.mulf %80, %86 : vector<2x32xf32>
    %88 = vector.extract_strided_slice %50 {offsets = [4, 0], sizes = [2, 128], strides = [1, 1]} : vector<8x128xf32> to vector<2x128xf32>
    %89 = arith.truncf %87 : vector<2x32xf32> to vector<2x32xbf16>
    %cst_21 = arith.constant dense<0.000000e+00> : vector<2x128xf32>
    %90 = tpu.matmul %89, %51, %cst_21 {dimension_numbers = #tpu.dot_dimension_numbers<[1], [0], [0], [1], [0, 0, 1, 1], [], []>} : vector<2x32xbf16>, vector<32x128xbf16>, vector<2x128xf32> -> vector<2x128xf32>
    %91 = arith.addf %88, %90 : vector<2x128xf32>
    %92 = arith.negf %91 : vector<2x128xf32>
    %93 = math.exp %92 : vector<2x128xf32>
    %cst_22 = arith.constant 1.000000e+00 : f32
    %94 = vector.broadcast %cst_22 : f32 to vector<2x128xf32>
    %95 = arith.addf %94, %93 : vector<2x128xf32>
    %96 = arith.divf %94, %95 : vector<2x128xf32>
    %97 = vector.extract_strided_slice %96 {offsets = [0, 0], sizes = [2, 32], strides = [1, 1]} : vector<2x128xf32> to vector<2x32xf32>
    %98 = vector.extract_strided_slice %96 {offsets = [0, 32], sizes = [2, 32], strides = [1, 1]} : vector<2x128xf32> to vector<2x32xf32>
    %99 = vector.extract_strided_slice %96 {offsets = [0, 96], sizes = [2, 32], strides = [1, 1]} : vector<2x128xf32> to vector<2x32xf32>
    %100 = vector.extract_strided_slice %91 {offsets = [0, 64], sizes = [2, 32], strides = [1, 1]} : vector<2x128xf32> to vector<2x32xf32>
    %101 = math.tanh %100 : vector<2x32xf32>
    %102 = arith.mulf %98, %85 : vector<2x32xf32>
    %103 = arith.mulf %97, %101 : vector<2x32xf32>
    %104 = arith.addf %102, %103 : vector<2x32xf32>
    %105 = math.tanh %104 : vector<2x32xf32>
    %106 = arith.mulf %99, %105 : vector<2x32xf32>
    %107 = vector.extract_strided_slice %50 {offsets = [6, 0], sizes = [2, 128], strides = [1, 1]} : vector<8x128xf32> to vector<2x128xf32>
    %108 = arith.truncf %106 : vector<2x32xf32> to vector<2x32xbf16>
    %cst_23 = arith.constant dense<0.000000e+00> : vector<2x128xf32>
    %109 = tpu.matmul %108, %51, %cst_23 {dimension_numbers = #tpu.dot_dimension_numbers<[1], [0], [0], [1], [0, 0, 1, 1], [], []>} : vector<2x32xbf16>, vector<32x128xbf16>, vector<2x128xf32> -> vector<2x128xf32>
    %110 = arith.addf %107, %109 : vector<2x128xf32>
    %111 = arith.negf %110 : vector<2x128xf32>
    %112 = math.exp %111 : vector<2x128xf32>
    %cst_24 = arith.constant 1.000000e+00 : f32
    %113 = vector.broadcast %cst_24 : f32 to vector<2x128xf32>
    %114 = arith.addf %113, %112 : vector<2x128xf32>
    %115 = arith.divf %113, %114 : vector<2x128xf32>
    %116 = vector.extract_strided_slice %115 {offsets = [0, 0], sizes = [2, 32], strides = [1, 1]} : vector<2x128xf32> to vector<2x32xf32>
    %117 = vector.extract_strided_slice %115 {offsets = [0, 32], sizes = [2, 32], strides = [1, 1]} : vector<2x128xf32> to vector<2x32xf32>
    %118 = vector.extract_strided_slice %115 {offsets = [0, 96], sizes = [2, 32], strides = [1, 1]} : vector<2x128xf32> to vector<2x32xf32>
    %119 = vector.extract_strided_slice %110 {offsets = [0, 64], sizes = [2, 32], strides = [1, 1]} : vector<2x128xf32> to vector<2x32xf32>
    %120 = math.tanh %119 : vector<2x32xf32>
    %121 = arith.mulf %117, %104 : vector<2x32xf32>
    %122 = arith.mulf %116, %120 : vector<2x32xf32>
    %123 = arith.addf %121, %122 : vector<2x32xf32>
    %124 = math.tanh %123 : vector<2x32xf32>
    %125 = arith.mulf %118, %124 : vector<2x32xf32>
    %126 = tpu.concatenate %68, %87, %106, %125 in 0 : vector<2x32xf32>, vector<2x32xf32>, vector<2x32xf32>, vector<2x32xf32> -> vector<8x32xf32>
    %c416 = arith.constant 416 : index
    %c0_25 = arith.constant 0 : index
    %127 = vector.load %arg1[%c416, %c0_25] : memref<640x128xbf16, #tpu.memory_space<vmem>>, vector<32x64xbf16>
    %128 = arith.truncf %126 : vector<8x32xf32> to vector<8x32xbf16>
    %cst_26 = arith.constant dense<0.000000e+00> : vector<8x64xf32>
    %129 = tpu.matmul %128, %127, %cst_26 {dimension_numbers = #tpu.dot_dimension_numbers<[1], [0], [0], [1], [0, 0, 1, 1], [], []>} : vector<8x32xbf16>, vector<32x64xbf16>, vector<8x64xf32> -> vector<8x64xf32>
    %c6 = arith.constant 6 : index
    %c0_27 = arith.constant 0 : index
    %130 = vector.load %arg2[%c6, %c0_27] : memref<16x128xf32, #tpu.memory_space<vmem>>, vector<1x64xf32>
    %131 = vector.broadcast %130 : vector<1x64xf32> to vector<8x64xf32>
    %132 = arith.addf %129, %131 : vector<8x64xf32>
    %cst_28 = arith.constant 0.000000e+00 : f32
    %133 = vector.broadcast %cst_28 : f32 to vector<8x64xf32>
    %134 = arith.maximumf %132, %133 : vector<8x64xf32>
    %c448 = arith.constant 448 : index
    %c0_29 = arith.constant 0 : index
    %135 = vector.load %arg1[%c448, %c0_29] : memref<640x128xbf16, #tpu.memory_space<vmem>>, vector<64x64xbf16>
    %136 = arith.truncf %134 : vector<8x64xf32> to vector<8x64xbf16>
    %cst_30 = arith.constant dense<0.000000e+00> : vector<8x64xf32>
    %137 = tpu.matmul %136, %135, %cst_30 {dimension_numbers = #tpu.dot_dimension_numbers<[1], [0], [0], [1], [0, 0, 1, 1], [], []>} : vector<8x64xbf16>, vector<64x64xbf16>, vector<8x64xf32> -> vector<8x64xf32>
    %c7 = arith.constant 7 : index
    %c0_31 = arith.constant 0 : index
    %138 = vector.load %arg2[%c7, %c0_31] : memref<16x128xf32, #tpu.memory_space<vmem>>, vector<1x64xf32>
    %139 = vector.broadcast %138 : vector<1x64xf32> to vector<8x64xf32>
    %140 = arith.addf %137, %139 : vector<8x64xf32>
    %141 = vector.extract_strided_slice %140 {offsets = [0, 0], sizes = [8, 32], strides = [1, 1]} : vector<8x64xf32> to vector<8x32xf32>
    %142 = vector.extract_strided_slice %140 {offsets = [0, 32], sizes = [8, 32], strides = [1, 1]} : vector<8x64xf32> to vector<8x32xf32>
    %c160 = arith.constant 160 : index
    %c0_32 = arith.constant 0 : index
    %143 = vector.load %arg1[%c160, %c0_32] : memref<640x128xbf16, #tpu.memory_space<vmem>>, vector<32x32xbf16>
    %144 = arith.truncf %32 : vector<24x32xf32> to vector<24x32xbf16>
    %cst_33 = arith.constant dense<0.000000e+00> : vector<24x32xf32>
    %145 = tpu.matmul %144, %143, %cst_33 {dimension_numbers = #tpu.dot_dimension_numbers<[1], [0], [0], [1], [0, 0, 1, 1], [], []>} : vector<24x32xbf16>, vector<32x32xbf16>, vector<24x32xf32> -> vector<24x32xf32>
    %c192 = arith.constant 192 : index
    %c0_34 = arith.constant 0 : index
    %146 = vector.load %arg1[%c192, %c0_34] : memref<640x128xbf16, #tpu.memory_space<vmem>>, vector<32x32xbf16>
    %147 = arith.truncf %34 : vector<24x32xf32> to vector<24x32xbf16>
    %cst_35 = arith.constant dense<0.000000e+00> : vector<24x32xf32>
    %148 = tpu.matmul %147, %146, %cst_35 {dimension_numbers = #tpu.dot_dimension_numbers<[1], [0], [0], [1], [0, 0, 1, 1], [], []>} : vector<24x32xbf16>, vector<32x32xbf16>, vector<24x32xf32> -> vector<24x32xf32>
    %149 = arith.addf %145, %148 : vector<24x32xf32>
    %c1 = arith.constant 1 : index
    %c0_36 = arith.constant 0 : index
    %150 = vector.load %arg2[%c1, %c0_36] : memref<16x128xf32, #tpu.memory_space<vmem>>, vector<1x32xf32>
    %151 = vector.broadcast %150 : vector<1x32xf32> to vector<24x32xf32>
    %152 = arith.addf %149, %151 : vector<24x32xf32>
    %cst_37 = arith.constant 0.000000e+00 : f32
    %153 = vector.broadcast %cst_37 : f32 to vector<24x32xf32>
    %154 = arith.maximumf %152, %153 : vector<24x32xf32>
    %c224 = arith.constant 224 : index
    %c0_38 = arith.constant 0 : index
    %155 = vector.load %arg1[%c224, %c0_38] : memref<640x128xbf16, #tpu.memory_space<vmem>>, vector<32x32xbf16>
    %156 = arith.truncf %154 : vector<24x32xf32> to vector<24x32xbf16>
    %cst_39 = arith.constant dense<0.000000e+00> : vector<24x32xf32>
    %157 = tpu.matmul %156, %155, %cst_39 {dimension_numbers = #tpu.dot_dimension_numbers<[1], [0], [0], [1], [0, 0, 1, 1], [], []>} : vector<24x32xbf16>, vector<32x32xbf16>, vector<24x32xf32> -> vector<24x32xf32>
    %c2 = arith.constant 2 : index
    %c0_40 = arith.constant 0 : index
    %158 = vector.load %arg2[%c2, %c0_40] : memref<16x128xf32, #tpu.memory_space<vmem>>, vector<1x32xf32>
    %159 = vector.broadcast %158 : vector<1x32xf32> to vector<24x32xf32>
    %160 = arith.addf %157, %159 : vector<24x32xf32>
    %cst_41 = arith.constant 0.000000e+00 : f32
    %161 = vector.broadcast %cst_41 : f32 to vector<24x32xf32>
    %162 = arith.maximumf %160, %161 : vector<24x32xf32>
    %c256 = arith.constant 256 : index
    %c0_42 = arith.constant 0 : index
    %163 = vector.load %arg1[%c256, %c0_42] : memref<640x128xbf16, #tpu.memory_space<vmem>>, vector<32x32xbf16>
    %164 = arith.truncf %33 : vector<24x32xf32> to vector<24x32xbf16>
    %cst_43 = arith.constant dense<0.000000e+00> : vector<24x32xf32>
    %165 = tpu.matmul %164, %163, %cst_43 {dimension_numbers = #tpu.dot_dimension_numbers<[1], [0], [0], [1], [0, 0, 1, 1], [], []>} : vector<24x32xbf16>, vector<32x32xbf16>, vector<24x32xf32> -> vector<24x32xf32>
    %c288 = arith.constant 288 : index
    %c0_44 = arith.constant 0 : index
    %166 = vector.load %arg1[%c288, %c0_44] : memref<640x128xbf16, #tpu.memory_space<vmem>>, vector<32x32xbf16>
    %167 = arith.truncf %35 : vector<24x32xf32> to vector<24x32xbf16>
    %cst_45 = arith.constant dense<0.000000e+00> : vector<24x32xf32>
    %168 = tpu.matmul %167, %166, %cst_45 {dimension_numbers = #tpu.dot_dimension_numbers<[1], [0], [0], [1], [0, 0, 1, 1], [], []>} : vector<24x32xbf16>, vector<32x32xbf16>, vector<24x32xf32> -> vector<24x32xf32>
    %169 = arith.addf %165, %168 : vector<24x32xf32>
    %c3 = arith.constant 3 : index
    %c0_46 = arith.constant 0 : index
    %170 = vector.load %arg2[%c3, %c0_46] : memref<16x128xf32, #tpu.memory_space<vmem>>, vector<1x32xf32>
    %171 = vector.broadcast %170 : vector<1x32xf32> to vector<24x32xf32>
    %172 = arith.addf %169, %171 : vector<24x32xf32>
    %cst_47 = arith.constant 0.000000e+00 : f32
    %173 = vector.broadcast %cst_47 : f32 to vector<24x32xf32>
    %174 = arith.maximumf %172, %173 : vector<24x32xf32>
    %c320 = arith.constant 320 : index
    %c0_48 = arith.constant 0 : index
    %175 = vector.load %arg1[%c320, %c0_48] : memref<640x128xbf16, #tpu.memory_space<vmem>>, vector<32x32xbf16>
    %176 = arith.truncf %174 : vector<24x32xf32> to vector<24x32xbf16>
    %cst_49 = arith.constant dense<0.000000e+00> : vector<24x32xf32>
    %177 = tpu.matmul %176, %175, %cst_49 {dimension_numbers = #tpu.dot_dimension_numbers<[1], [0], [0], [1], [0, 0, 1, 1], [], []>} : vector<24x32xbf16>, vector<32x32xbf16>, vector<24x32xf32> -> vector<24x32xf32>
    %c4 = arith.constant 4 : index
    %c0_50 = arith.constant 0 : index
    %178 = vector.load %arg2[%c4, %c0_50] : memref<16x128xf32, #tpu.memory_space<vmem>>, vector<1x32xf32>
    %179 = vector.broadcast %178 : vector<1x32xf32> to vector<24x32xf32>
    %180 = arith.addf %177, %179 : vector<24x32xf32>
    %cst_51 = arith.constant 0.000000e+00 : f32
    %181 = vector.broadcast %cst_51 : f32 to vector<24x32xf32>
    %182 = arith.maximumf %180, %181 : vector<24x32xf32>
    %183 = tpu.concatenate %162, %182 in 0 : vector<24x32xf32>, vector<24x32xf32> -> vector<48x32xf32>
    %c512 = arith.constant 512 : index
    %c0_52 = arith.constant 0 : index
    %184 = vector.load %arg1[%c512, %c0_52] : memref<640x128xbf16, #tpu.memory_space<vmem>>, vector<32x32xbf16>
    %185 = arith.truncf %183 : vector<48x32xf32> to vector<48x32xbf16>
    %cst_53 = arith.constant dense<0.000000e+00> : vector<48x32xf32>
    %186 = tpu.matmul %185, %184, %cst_53 {dimension_numbers = #tpu.dot_dimension_numbers<[1], [0], [0], [1], [0, 0, 1, 1], [], []>} : vector<48x32xbf16>, vector<32x32xbf16>, vector<48x32xf32> -> vector<48x32xf32>
    %c8 = arith.constant 8 : index
    %c0_54 = arith.constant 0 : index
    %187 = vector.load %arg2[%c8, %c0_54] : memref<16x128xf32, #tpu.memory_space<vmem>>, vector<1x32xf32>
    %188 = vector.broadcast %187 : vector<1x32xf32> to vector<48x32xf32>
    %189 = arith.addf %186, %188 : vector<48x32xf32>
    %cst_55 = arith.constant 0.000000e+00 : f32
    %190 = vector.broadcast %cst_55 : f32 to vector<48x32xf32>
    %191 = arith.maximumf %189, %190 : vector<48x32xf32>
    %c544 = arith.constant 544 : index
    %c0_56 = arith.constant 0 : index
    %192 = vector.load %arg1[%c544, %c0_56] : memref<640x128xbf16, #tpu.memory_space<vmem>>, vector<32x32xbf16>
    %193 = arith.truncf %191 : vector<48x32xf32> to vector<48x32xbf16>
    %cst_57 = arith.constant dense<0.000000e+00> : vector<48x32xf32>
    %194 = tpu.matmul %193, %192, %cst_57 {dimension_numbers = #tpu.dot_dimension_numbers<[1], [0], [0], [1], [0, 0, 1, 1], [], []>} : vector<48x32xbf16>, vector<32x32xbf16>, vector<48x32xf32> -> vector<48x32xf32>
    %c9 = arith.constant 9 : index
    %c0_58 = arith.constant 0 : index
    %195 = vector.load %arg2[%c9, %c0_58] : memref<16x128xf32, #tpu.memory_space<vmem>>, vector<1x32xf32>
    %196 = vector.broadcast %195 : vector<1x32xf32> to vector<48x32xf32>
    %197 = arith.addf %194, %196 : vector<48x32xf32>
    %198 = tpu.concatenate %142, %142, %142, %142, %142, %142 in 0 : vector<8x32xf32>, vector<8x32xf32>, vector<8x32xf32>, vector<8x32xf32>, vector<8x32xf32>, vector<8x32xf32> -> vector<48x32xf32>
    %199 = arith.addf %197, %198 : vector<48x32xf32>
    %200 = vector.extract_strided_slice %199 {offsets = [0, 0], sizes = [8, 32], strides = [1, 1]} : vector<48x32xf32> to vector<8x32xf32>
    %201 = vector.extract_strided_slice %199 {offsets = [8, 0], sizes = [8, 32], strides = [1, 1]} : vector<48x32xf32> to vector<8x32xf32>
    %202 = arith.maximumf %200, %201 : vector<8x32xf32>
    %203 = vector.extract_strided_slice %199 {offsets = [16, 0], sizes = [8, 32], strides = [1, 1]} : vector<48x32xf32> to vector<8x32xf32>
    %204 = arith.maximumf %202, %203 : vector<8x32xf32>
    %205 = vector.extract_strided_slice %199 {offsets = [24, 0], sizes = [8, 32], strides = [1, 1]} : vector<48x32xf32> to vector<8x32xf32>
    %206 = arith.maximumf %204, %205 : vector<8x32xf32>
    %207 = vector.extract_strided_slice %199 {offsets = [32, 0], sizes = [8, 32], strides = [1, 1]} : vector<48x32xf32> to vector<8x32xf32>
    %208 = arith.maximumf %206, %207 : vector<8x32xf32>
    %209 = vector.extract_strided_slice %199 {offsets = [40, 0], sizes = [8, 32], strides = [1, 1]} : vector<48x32xf32> to vector<8x32xf32>
    %210 = arith.maximumf %208, %209 : vector<8x32xf32>
    %211 = tpu.concatenate %210, %210, %210, %210, %210, %210 in 0 : vector<8x32xf32>, vector<8x32xf32>, vector<8x32xf32>, vector<8x32xf32>, vector<8x32xf32>, vector<8x32xf32> -> vector<48x32xf32>
    %212 = arith.subf %199, %211 : vector<48x32xf32>
    %213 = math.exp %212 : vector<48x32xf32>
    %214 = vector.extract_strided_slice %213 {offsets = [0, 0], sizes = [8, 32], strides = [1, 1]} : vector<48x32xf32> to vector<8x32xf32>
    %215 = vector.extract_strided_slice %213 {offsets = [0, 0], sizes = [8, 32], strides = [1, 1]} : vector<48x32xf32> to vector<8x32xf32>
    %216 = vector.extract_strided_slice %183 {offsets = [0, 0], sizes = [8, 32], strides = [1, 1]} : vector<48x32xf32> to vector<8x32xf32>
    %217 = arith.mulf %215, %216 : vector<8x32xf32>
    %218 = vector.extract_strided_slice %213 {offsets = [8, 0], sizes = [8, 32], strides = [1, 1]} : vector<48x32xf32> to vector<8x32xf32>
    %219 = arith.addf %214, %218 : vector<8x32xf32>
    %220 = vector.extract_strided_slice %183 {offsets = [8, 0], sizes = [8, 32], strides = [1, 1]} : vector<48x32xf32> to vector<8x32xf32>
    %221 = arith.mulf %218, %220 : vector<8x32xf32>
    %222 = arith.addf %217, %221 : vector<8x32xf32>
    %223 = vector.extract_strided_slice %213 {offsets = [16, 0], sizes = [8, 32], strides = [1, 1]} : vector<48x32xf32> to vector<8x32xf32>
    %224 = arith.addf %219, %223 : vector<8x32xf32>
    %225 = vector.extract_strided_slice %183 {offsets = [16, 0], sizes = [8, 32], strides = [1, 1]} : vector<48x32xf32> to vector<8x32xf32>
    %226 = arith.mulf %223, %225 : vector<8x32xf32>
    %227 = arith.addf %222, %226 : vector<8x32xf32>
    %228 = vector.extract_strided_slice %213 {offsets = [24, 0], sizes = [8, 32], strides = [1, 1]} : vector<48x32xf32> to vector<8x32xf32>
    %229 = arith.addf %224, %228 : vector<8x32xf32>
    %230 = vector.extract_strided_slice %183 {offsets = [24, 0], sizes = [8, 32], strides = [1, 1]} : vector<48x32xf32> to vector<8x32xf32>
    %231 = arith.mulf %228, %230 : vector<8x32xf32>
    %232 = arith.addf %227, %231 : vector<8x32xf32>
    %233 = vector.extract_strided_slice %213 {offsets = [32, 0], sizes = [8, 32], strides = [1, 1]} : vector<48x32xf32> to vector<8x32xf32>
    %234 = arith.addf %229, %233 : vector<8x32xf32>
    %235 = vector.extract_strided_slice %183 {offsets = [32, 0], sizes = [8, 32], strides = [1, 1]} : vector<48x32xf32> to vector<8x32xf32>
    %236 = arith.mulf %233, %235 : vector<8x32xf32>
    %237 = arith.addf %232, %236 : vector<8x32xf32>
    %238 = vector.extract_strided_slice %213 {offsets = [40, 0], sizes = [8, 32], strides = [1, 1]} : vector<48x32xf32> to vector<8x32xf32>
    %239 = arith.addf %234, %238 : vector<8x32xf32>
    %240 = vector.extract_strided_slice %183 {offsets = [40, 0], sizes = [8, 32], strides = [1, 1]} : vector<48x32xf32> to vector<8x32xf32>
    %241 = arith.mulf %238, %240 : vector<8x32xf32>
    %242 = arith.addf %237, %241 : vector<8x32xf32>
    %243 = tpu.reciprocal %239 {approx = true} : vector<8x32xf32> -> vector<8x32xf32>
    %244 = arith.mulf %242, %243 : vector<8x32xf32>
    %245 = arith.addf %141, %244 : vector<8x32xf32>
    %c576 = arith.constant 576 : index
    %c0_59 = arith.constant 0 : index
    %246 = vector.load %arg1[%c576, %c0_59] : memref<640x128xbf16, #tpu.memory_space<vmem>>, vector<32x32xbf16>
    %247 = arith.truncf %245 : vector<8x32xf32> to vector<8x32xbf16>
    %cst_60 = arith.constant dense<0.000000e+00> : vector<8x32xf32>
    %248 = tpu.matmul %247, %246, %cst_60 {dimension_numbers = #tpu.dot_dimension_numbers<[1], [0], [0], [1], [0, 0, 1, 1], [], []>} : vector<8x32xbf16>, vector<32x32xbf16>, vector<8x32xf32> -> vector<8x32xf32>
    %c10 = arith.constant 10 : index
    %c0_61 = arith.constant 0 : index
    %249 = vector.load %arg2[%c10, %c0_61] : memref<16x128xf32, #tpu.memory_space<vmem>>, vector<1x32xf32>
    %250 = vector.broadcast %249 : vector<1x32xf32> to vector<8x32xf32>
    %251 = arith.addf %248, %250 : vector<8x32xf32>
    %cst_62 = arith.constant 0.000000e+00 : f32
    %252 = vector.broadcast %cst_62 : f32 to vector<8x32xf32>
    %253 = arith.maximumf %251, %252 : vector<8x32xf32>
    %c608 = arith.constant 608 : index
    %c0_63 = arith.constant 0 : index
    %254 = vector.load %arg1[%c608, %c0_63] : memref<640x128xbf16, #tpu.memory_space<vmem>>, vector<32x16xbf16>
    %255 = arith.truncf %253 : vector<8x32xf32> to vector<8x32xbf16>
    %cst_64 = arith.constant dense<0.000000e+00> : vector<8x16xf32>
    %256 = tpu.matmul %255, %254, %cst_64 {dimension_numbers = #tpu.dot_dimension_numbers<[1], [0], [0], [1], [0, 0, 1, 1], [], []>} : vector<8x32xbf16>, vector<32x16xbf16>, vector<8x16xf32> -> vector<8x16xf32>
    %c11 = arith.constant 11 : index
    %c0_65 = arith.constant 0 : index
    %257 = vector.load %arg2[%c11, %c0_65] : memref<16x128xf32, #tpu.memory_space<vmem>>, vector<1x16xf32>
    %258 = vector.broadcast %257 : vector<1x16xf32> to vector<8x16xf32>
    %259 = arith.addf %256, %258 : vector<8x16xf32>
    %c0_66 = arith.constant 0 : index
    %c0_67 = arith.constant 0 : index
    %260 = vector.load %arg3[%c0_66, %c0_67] : memref<8x16xf32, #tpu.memory_space<vmem>>, vector<8x16xf32>
    tpu.vector_store %arg3[%c0_66, %c0_67], %259 {strides = array<i32>} : memref<8x16xf32, #tpu.memory_space<vmem>>, vector<8x16xf32>,
    return
  }
}

</mosaic_0001>

<bundles_post_ra>
// kernel: forward.1
= control target key start
LH: loop header
LB: loop body
LE: loop exit
PB: predicated region body
PF: predicated region fallthrough
CT: control target
= control target key end

     0   :  { %v2688_v0 = vmov 0   ;;  %v2689_v5 = vmov 0.0   ;;  %vm2690_vm0 = vmmov 0   ;;  %v43_v36 = vlaneseq  ;;  %s2691_s14 = smov 64   ;;  %s2692_s15 = smov 32   ;;  %s3250_s0 = inlined_call_operand.vmem [shape: s32[224,1], index: 0, kind: input, shape index: {}]   ;;  %s3251_s1 = inlined_call_operand.vmem [shape: bf16[640,128], index: 1, kind: input, shape index: {}]   ;;  %s3252_s2 = inlined_call_operand.vmem [shape: f32[16,128], index: 2, kind: input, shape index: {}]   ;;  %s3253_s3 = inlined_call_operand.vmem [shape: f32[8,16], index: 3, kind: output, shape index: {}]  }
   0x1   :  { %2601 = vset.pattern.permute.xlu1 %v2688_v0  ;;  %2600 = vset.pattern.permute.xlu0 %v2688_v0  ;;  %v28_v1 = vld [vmem:[%s3250_s0 + $0x68] sm:$0xff]  ;;  %v26_v2 = vld [vmem:[%s3250_s0 + $0x58] sm:$0xff]  ;;  %v29_v3 = vld [vmem:[%s3250_s0 + $0x70] sm:$0xff]  ;;  %vm375_vm3 = vcmask 261120   ;;  %vm217_vm10 = vcmask 523264   ;;  %s2693_s10 = smov 96  }
   0x2   :  { %96 = vperm.xlu1 %2601, %v28_v1   ;;  %90 = vperm.xlu0 %2600, %v26_v2   ;;  %v27_v4 = vld [vmem:[%s3250_s0 + $0x60] sm:$0xff]  ;;  %v30_v7 = vld [vmem:[%s3250_s0 + $0x78] sm:$0xff]  ;;  %v33_v8 = vld [vmem:[%s3250_s0 + $0x90] sm:$0xff]  ;;  %v2821_v37 = vand.u32 127, %v43_v36 }
   0x3   :  { %2374 = vmatprep.subr.bf16.mxu1 %v2689_v5  ;;  %2378 = vmatprep.mubr.msk.bf16.mxu1 %vm2690_vm0, %v2689_v5  ;;  %v31_v6 = vld [vmem:[%s3250_s0 + $0x80] sm:$0xff]  ;;  %v32_v9 = vld [vmem:[%s3250_s0 + $0x88] sm:$0xff]  ;;  %v34_v13 = vld [vmem:[%s3250_s0 + $0x98] sm:$0xff] }
   0x4   :  { %v2602_v10 = vld [vmem:[%s3251_s1 + $0x28] sm:$0xff]   ;;  %v2603_v11 = vld [vmem:[%s3251_s1 + $0x20] sm:$0xff]   ;;  %v2604_v14 = vld [vmem:[%s3251_s1 + $0x18] sm:$0xff]  }
   0x5   :  { %v35_v12 = vld [vmem:[%s3250_s0 + $0xa0] sm:$0xff]  ;;  %2375 = vmatpush3.bf16.msra.mxu1 %v2602_v10  ;;  %2354 = vmatprep.subr.bf16.mxu0 %v2604_v14  ;;  %v2605_v15 = vld [vmem:[%s3251_s1 + $0x10] sm:$0xff]   ;;  %v16_v16 = vld [vmem:[%s3250_s0 + $0x8] sm:$0xff] }
   0x6   :  { %99 = vperm.xlu1 %2601, %v29_v3   ;;  %93 = vperm.xlu0 %2600, %v27_v4   ;;  %v15_v17 = vld [vmem:[%s3250_s0] sm:$0xff]  ;;  %v2606_v18 = vld [vmem:[%s3251_s1 + $0x8] sm:$0xff]   ;;  %v37_v19 = vld [vmem:[%s3250_s0 + $0xb0] sm:$0xff] }
   0x7   :  { %2376 = vmatprep.subr.bf16.mxu1 %v2689_v5  ;;  %2355 = vmatpush3.bf16.msra.mxu0 %v2604_v14  ;;  %v36_v20 = vld [vmem:[%s3250_s0 + $0xa8] sm:$0xff]  ;;  %v2607_v21 = vld [vmem:[%s3251_s1] sm:$0xff]   ;;  %v18_v22 = vld [vmem:[%s3250_s0 + $0x18] sm:$0xff] }
   0x8   :  { %2356 = vmatprep.subr.bf16.mxu0 %v2605_v15  ;;  %v17_v23 = vld [vmem:[%s3250_s0 + $0x10] sm:$0xff]  ;;  %v20_v24 = vld [vmem:[%s3250_s0 + $0x28] sm:$0xff]  ;;  %v19_v25 = vld [vmem:[%s3250_s0 + $0x20] sm:$0xff] }
   0x9   :  { %2377 = vmatpush3.bf16.msra.mxu1 %v2603_v11  ;;  %v22_v26 = vld [vmem:[%s3250_s0 + $0x38] sm:$0xff]  ;;  %v21_v27 = vld [vmem:[%s3250_s0 + $0x30] sm:$0xff]  ;;  %v24_v28 = vld [vmem:[%s3250_s0 + $0x48] sm:$0xff] }
   0xa   :  { %105 = vperm.xlu1 %2601, %v31_v6   ;;  %102 = vperm.xlu0 %2600, %v30_v7   ;;  %v23_v29 = vld [vmem:[%s3250_s0 + $0x40] sm:$0xff]  ;;  %v38_v30 = vld [vmem:[%s3250_s0 + $0xb8] sm:$0xff]  ;;  %v25_v31 = vld [vmem:[%s3250_s0 + $0x50] sm:$0xff] }
   0xb   :  { %2446 = vmatprep.subr.bf16.mxu1 %v2689_v5  ;;  %2357 = vmatpush3.bf16.msra.mxu0 %v2605_v15  ;;  %v40_v32 = vld [vmem:[%s3250_s0 + $0xc8] sm:$0xff]  ;;  %v39_v33 = vld [vmem:[%s3250_s0 + $0xc0] sm:$0xff]  ;;  %v42_v34 = vld [vmem:[%s3250_s0 + $0xd8] sm:$0xff] }
   0xc   :  { %2358 = vmatprep.subr.bf16.mxu0 %v2606_v18  ;;  %v41_v35 = vld [vmem:[%s3250_s0 + $0xd0] sm:$0xff] }
   0xe   :  { %111 = vperm.xlu1 %2601, %v33_v8   ;;  %108 = vperm.xlu0 %2600, %v32_v9  }
   0xf   :  { %2359 = vmatpush3.bf16.msra.mxu0 %v2606_v18 }
  0x10   :  { %2360 = vmatprep.subr.bf16.mxu0 %v2607_v21 }
  0x12   :  { %117 = vperm.xlu1 %2601, %v35_v12   ;;  %114 = vperm.xlu0 %2600, %v34_v13  }
  0x13   :  { %2361 = vmatpush3.bf16.msra.mxu0 %v2607_v21 }
  0x16   :  { %49 = vperm.xlu1 %2601, %v16_v16   ;;  %46 = vperm.xlu0 %2600, %v15_v17  }
  0x1a   :  { %123 = vperm.xlu1 %2601, %v37_v19   ;;  %120 = vperm.xlu0 %2600, %v36_v20  }
  0x1e   :  { %55 = vperm.xlu1 %2601, %v18_v22   ;;  %52 = vperm.xlu0 %2600, %v17_v23  }
  0x22   :  { %61 = vperm.xlu1 %2601, %v20_v24   ;;  %58 = vperm.xlu0 %2600, %v19_v25  }
  0x26   :  { %67 = vperm.xlu1 %2601, %v22_v26   ;;  %64 = vperm.xlu0 %2600, %v21_v27  }
  0x2a   :  { %73 = vperm.xlu1 %2601, %v24_v28   ;;  %70 = vperm.xlu0 %2600, %v23_v29  }
  0x2e   :  { %126 = vperm.xlu1 %2601, %v38_v30   ;;  %76 = vperm.xlu0 %2600, %v25_v31  }
  0x32   :  { %132 = vperm.xlu1 %2601, %v40_v32   ;;  %129 = vperm.xlu0 %2600, %v39_v33  }
  0x36   :  { %138 = vperm.xlu1 %2601, %v42_v34   ;;  %135 = vperm.xlu0 %2600, %v41_v35  }
  0x7d   :  { %v97_v38 = vpop.permute.xlu1 %96  ;;  %v91_v39 = vpop.permute.xlu0 %90 }
  0x7e   :  { %vm140_vm1 = vcmp.eq.s32.totalorder %v2821_v37, %v91_v39  ;;  %vm142_vm4 = vcmp.eq.s32.totalorder %v2821_v37, %v97_v38 }
  0x7f   :  { %v2141_v42 = vsel %vm140_vm1, 1.0, %v2689_v5  ;;  %v2143_v47 = vsel %vm142_vm4, 1.0, %v2689_v5 }
  0x81   :  { %v100_v40 = vpop.permute.xlu1 %99  ;;  %v94_v41 = vpop.permute.xlu0 %93 }
  0x82   :  { %vm141_vm2 = vcmp.eq.s32.totalorder %v2821_v37, %v94_v41  ;;  %vm143_vm5 = vcmp.eq.s32.totalorder %v2821_v37, %v100_v40 }
  0x83   :  { %v2142_v43 = vsel %vm141_vm2, 1.0, %v2689_v5  ;;  %v2144_v48 = vsel %vm143_vm5, 1.0, %v2689_v5 }
  0x84   :  { %v354_v44 = vpack.c.bf16 %v2142_v43, %v2141_v42  ;;  %v355_v51 = vpack.c.bf16 %v2144_v48, %v2143_v47  ;;  %v2608_v47 = vld [vmem:[%s3251_s1 + $0x48] sm:$0xff]   ;;  %v2610_v48 = vld [vmem:[%s3251_s1 + $0x38] sm:$0xff]  }
  0x85   :  { %v106_v45 = vpop.permute.xlu1 %105  ;;  %v103_v46 = vpop.permute.xlu0 %102  ;;  %2414 = vmatprep.subr.bf16.mxu0 %v2608_v47 }
  0x86   :  { %2379 = vmatmul.mubr.msk.bf16.vlgmr.msra.gmra.mxu1 %vm375_vm3, %v354_v44  ;;  %vm145_vm6 = vcmp.eq.s32.totalorder %v2821_v37, %v106_v45  ;;  %vm144_vm7 = vcmp.eq.s32.totalorder %v2821_v37, %v103_v46 }
  0x87   :  { %2382 = vmatprep.mubr.msk.bf16.mxu1 %vm2690_vm0, %v2689_v5  ;;  %v2146_v54 = vsel %vm145_vm6, 1.0, %v2689_v5  ;;  %v2145_v55 = vsel %vm144_vm7, 1.0, %v2689_v5 }
  0x88   :  { %v356_v60 = vpack.c.bf16 %v2146_v54, %v2145_v55 }
  0x89   :  { %v112_v49 = vpop.permute.xlu1 %111  ;;  %v109_v50 = vpop.permute.xlu0 %108 }
  0x8a   :  { %vm147_vm11 = vcmp.eq.s32.totalorder %v2821_v37, %v112_v49  ;;  %vm146_vm12 = vcmp.eq.s32.totalorder %v2821_v37, %v109_v50  ;;  %v2612_v49 = vld [vmem:[%s3251_s1 + $0xb8] sm:$0xff]  }
  0x8b   :  { %v2148_v0 = vsel %vm147_vm11, 1.0, %v2689_v5  ;;  %v2147_v1 = vsel %vm146_vm12, 1.0, %v2689_v5  ;;  %2447 = vmatpush3.bf16.msra.mxu1 %v2612_v49 }
  0x8c   :  { %v357_v7 = vpack.c.bf16 %v2148_v0, %v2147_v1  ;;  %2448 = vmatprep.subr.bf16.mxu1 %v2689_v5 }
  0x8d   :  { %v118_v52 = vpop.permute.xlu1 %117  ;;  %v115_v53 = vpop.permute.xlu0 %114 }
  0x8e   :  { %2383 = vmatmul.mubr.msk.bf16.gmra.mxu1 %vm375_vm3, %v355_v51  ;;  %vm149_vm15 = vcmp.eq.s32.totalorder %v2821_v37, %v118_v52  ;;  %vm148_vm1 = vcmp.eq.s32.totalorder %v2821_v37, %v115_v53 }
  0x8f   :  { %2386 = vmatprep.mubr.msk.bf16.mxu1 %vm2690_vm0, %v2689_v5  ;;  %v2150_v14 = vsel %vm149_vm15, 1.0, %v2689_v5  ;;  %v2149_v15 = vsel %vm148_vm1, 1.0, %v2689_v5 }
  0x90   :  { %v358_v20 = vpack.c.bf16 %v2150_v14, %v2149_v15 }
  0x91   :  { %v50_v56 = vpop.permute.xlu1 %49  ;;  %v47_v57 = vpop.permute.xlu0 %46 }
  0x92   :  { %vm79_vm8 = vcmp.eq.s32.totalorder %v2821_v37, %v50_v56  ;;  %vm78_vm9 = vcmp.eq.s32.totalorder %v2821_v37, %v47_v57 }
  0x93   :  { %v2121_v58 = vsel %vm79_vm8, 1.0, %v2689_v5  ;;  %v2120_v59 = vsel %vm78_vm9, 1.0, %v2689_v5 }
  0x94   :  { %v187_v61 = vpack.c.bf16 %v2121_v58, %v2120_v59  ;;  %v2611_v59 = vld [vmem:[%s3251_s1 + $0x30] sm:$0xff]  }
  0x95   :  { %v124_v62 = vpop.permute.xlu1 %123  ;;  %v121_v63 = vpop.permute.xlu0 %120 }
  0x96   :  { %2362 = vmatprep.mubr.msk.bf16.mxu0 %vm217_vm10, %v187_v61  ;;  %2387 = vmatmul.mubr.msk.bf16.gmra.mxu1 %vm375_vm3, %v356_v60  ;;  %vm151_vm7 = vcmp.eq.s32.totalorder %v2821_v37, %v124_v62  ;;  %vm150_vm8 = vcmp.eq.s32.totalorder %v2821_v37, %v121_v63 }
  0x97   :  { %2390 = vmatprep.mubr.msk.bf16.mxu1 %vm2690_vm0, %v2689_v5  ;;  %v2152_v27 = vsel %vm151_vm7, 1.0, %v2689_v5  ;;  %v2151_v28 = vsel %vm150_vm8, 1.0, %v2689_v5 }
  0x98   :  { %v359_v31 = vpack.c.bf16 %v2152_v27, %v2151_v28 }
  0x99   :  { %v56_v2 = vpop.permute.xlu1 %55  ;;  %v53_v3 = vpop.permute.xlu0 %52 }
  0x9a   :  { %vm81_vm13 = vcmp.eq.s32.totalorder %v2821_v37, %v56_v2  ;;  %vm80_vm14 = vcmp.eq.s32.totalorder %v2821_v37, %v53_v3 }
  0x9b   :  { %v2123_v4 = vsel %vm81_vm13, 1.0, %v2689_v5  ;;  %v2122_v6 = vsel %vm80_vm14, 1.0, %v2689_v5 }
  0x9c   :  { %v188_v8 = vpack.c.bf16 %v2123_v4, %v2122_v6 }
  0x9d   :  { %v62_v9 = vpop.permute.xlu1 %61  ;;  %v59_v10 = vpop.permute.xlu0 %58 }
  0x9e   :  { %vm83_vm2 = vcmp.eq.s32.totalorder %v2821_v37, %v62_v9  ;;  %vm82_vm4 = vcmp.eq.s32.totalorder %v2821_v37, %v59_v10  ;;  %2363 = vmatmul.mubr.msk.bf16.vlgmr.msra.gmra.mxu0 %vm217_vm10, %v188_v8  ;;  %2391 = vmatmul.mubr.msk.bf16.gmra.mxu1 %vm375_vm3, %v357_v7 }
  0x9f   :  { %v2125_v11 = vsel %vm83_vm2, 1.0, %v2689_v5  ;;  %v2124_v12 = vsel %vm82_vm4, 1.0, %v2689_v5  ;;  %2394 = vmatprep.mubr.msk.bf16.mxu1 %vm2690_vm0, %v2689_v5  ;;  %2415 = vmatpush3.bf16.msra.mxu0 %v2608_v47  ;;  %vm1119_vm4 = vcmask 1041408  }
  0xa0   :  { %v189_v13 = vpack.c.bf16 %v2125_v11, %v2124_v12 }
  0xa1   :  { %v68_v16 = vpop.permute.xlu1 %67  ;;  %v65_v17 = vpop.permute.xlu0 %64 }
  0xa2   :  { %vm85_vm5 = vcmp.eq.s32.totalorder %v2821_v37, %v68_v16  ;;  %vm84_vm6 = vcmp.eq.s32.totalorder %v2821_v37, %v65_v17  ;;  %2366 = vmatprep.mubr.msk.bf16.mxu0 %vm217_vm10, %v189_v13 }
  0xa3   :  { %v2127_v18 = vsel %vm85_vm5, 1.0, %v2689_v5  ;;  %v2126_v19 = vsel %vm84_vm6, 1.0, %v2689_v5  ;;  %vm1121_vm5 = vcmask 1043456   ;;  %vm1123_vm6 = vcmask 1045504  }
  0xa4   :  { %v190_v21 = vpack.c.bf16 %v2127_v18, %v2126_v19 }
  0xa5   :  { %v74_v22 = vpop.permute.xlu1 %73  ;;  %v71_v23 = vpop.permute.xlu0 %70 }
  0xa6   :  { %vm87_vm9 = vcmp.eq.s32.totalorder %v2821_v37, %v74_v22  ;;  %vm86_vm11 = vcmp.eq.s32.totalorder %v2821_v37, %v71_v23  ;;  %2367 = vmatmul.mubr.msk.bf16.gmra.mxu0 %vm217_vm10, %v190_v21  ;;  %2395 = vmatmul.mubr.msk.bf16.gmra.mxu1 %vm375_vm3, %v358_v20 }
  0xa7   :  { %v2129_v24 = vsel %vm87_vm9, 1.0, %v2689_v5  ;;  %v2128_v25 = vsel %vm86_vm11, 1.0, %v2689_v5  ;;  %2398 = vmatprep.mubr.msk.bf16.mxu1 %vm2690_vm0, %v2689_v5 }
  0xa8   :  { %v191_v26 = vpack.c.bf16 %v2129_v24, %v2128_v25 }
  0xa9   :  { %v77_v29 = vpop.permute.xlu0 %76  ;;  %v127_v33 = vpop.permute.xlu1 %126 }
  0xaa   :  { %vm88_vm12 = vcmp.eq.s32.totalorder %v2821_v37, %v77_v29  ;;  %2370 = vmatprep.mubr.msk.bf16.mxu0 %vm217_vm10, %v191_v26  ;;  %vm152_vm14 = vcmp.eq.s32.totalorder %v2821_v37, %v127_v33 }
  0xab   :  { %v2130_v30 = vsel %vm88_vm12, 1.0, %v2689_v5  ;;  %v2153_v36 = vsel %vm152_vm14, 1.0, %v2689_v5 }
  0xac   :  { %v192_v32 = vpack.c.bf16 %v2130_v30, %v2130_v30 }
  0xad   :  { %v130_v34 = vpop.permute.xlu0 %129  ;;  %v133_v40 = vpop.permute.xlu1 %132 }
  0xae   :  { %vm153_vm13 = vcmp.eq.s32.totalorder %v2821_v37, %v130_v34  ;;  %2371 = vmatmul.mubr.msk.bf16.gmra.mxu0 %vm217_vm10, %v192_v32  ;;  %2399 = vmatmul.mubr.msk.bf16.gmra.mxu1 %vm375_vm3, %v359_v31  ;;  %vm154_vm1 = vcmp.eq.s32.totalorder %v2821_v37, %v133_v40 }
  0xaf   :  { %2402 = vmatprep.mubr.msk.bf16.mxu1 %vm2690_vm0, %v2689_v5  ;;  %v2154_v35 = vsel %vm153_vm13, 1.0, %v2689_v5  ;;  %v2155_v42 = vsel %vm154_vm1, 1.0, %v2689_v5 }
  0xb0   :  { %v360_v39 = vpack.c.bf16 %v2154_v35, %v2153_v36 }
  0xb1   :  { %v136_v38 = vpop.permute.xlu0 %135  ;;  %v139_v43 = vpop.permute.xlu1 %138 }
  0xb2   :  { %vm155_vm15 = vcmp.eq.s32.totalorder %v2821_v37, %v136_v38  ;;  %vm156_vm2 = vcmp.eq.s32.totalorder %v2821_v37, %v139_v43  ;;  %v2609_v37 = vld [vmem:[%s3251_s1 + $0x40] sm:$0xff]  }
  0xb3   :  { %v2156_v41 = vsel %vm155_vm15, 1.0, %v2689_v5  ;;  %v2157_v45 = vsel %vm156_vm2, 1.0, %v2689_v5  ;;  %2416 = vmatprep.subr.bf16.mxu0 %v2609_v37 }
  0xb4   :  { %v361_v44 = vpack.c.bf16 %v2156_v41, %v2155_v42  ;;  %v362_v46 = vpack.c.bf16 %v2157_v45, %v2157_v45  ;;  %2417 = vmatpush3.bf16.msra.mxu0 %v2609_v37 }
  0xb5   :  { %2430 = vmatprep.subr.bf16.mxu0 %v2610_v48 }
  0xb6   :  { %2403 = vmatmul.mubr.msk.bf16.gmra.mxu1 %vm375_vm3, %v360_v39 }
  0xb7   :  { %2406 = vmatprep.mubr.msk.bf16.mxu1 %vm2690_vm0, %v2689_v5 }
  0xbe   :  { %2407 = vmatmul.mubr.msk.bf16.gmra.mxu1 %vm375_vm3, %v361_v44 }
  0xbf   :  { %2410 = vmatprep.mubr.msk.bf16.mxu1 %vm2690_vm0, %v2689_v5 }
  0xc6   :  { %2411 = vmatmul.mubr.msk.bf16.gmra.mxu1 %vm375_vm3, %v362_v46 }
  0xc7   :  { %2450 = vmatprep.mubr.msk.bf16.mxu1 %vm2690_vm0, %v2689_v5 }
 0x146   :  { %v437_v50 = vpop.f32.mrf.mxu1 }
 0x148   :  { %v2380_v51 = vpop.f32.mrf.mxu1 }
 0x14a   :  { %v440_v52 = vpop.f32.mrf.mxu1 }
 0x14b   :  { %v521_v53 = vpack.c.bf16 %v440_v52, %v437_v50  ;;  %v2613_v50 = vld [vmem:[%s3251_s1 + $0xb0] sm:$0xff]  }
 0x14c   :  { %v2381_v54 = vpop.f32.mrf.mxu1  ;;  %2449 = vmatpush3.bf16.msra.mxu1 %v2613_v50 }
 0x14d   :  { %2418 = vmatprep.mubr.msk.bf16.mxu0 %vm375_vm3, %v521_v53  ;;  %2462 = vmatprep.subr.bf16.mxu1 %v2689_v5 }
 0x14e   :  { %v445_v55 = vpop.f32.mrf.mxu1 }
 0x150   :  { %v2384_v56 = vpop.f32.mrf.mxu1 }
 0x152   :  { %v448_v57 = vpop.f32.mrf.mxu1 }
 0x153   :  { %v522_v58 = vpack.c.bf16 %v448_v57, %v445_v55 }
 0x154   :  { %v2385_v60 = vpop.f32.mrf.mxu1 }
 0x155   :  { %2419 = vmatmul.mubr.msk.bf16.vlgmr.msra.gmra.mxu0 %vm375_vm3, %v522_v58 }
 0x156   :  { %v453_v61 = vpop.f32.mrf.mxu1  ;;  %2431 = vmatpush3.bf16.msra.mxu0 %v2610_v48 }
 0x157   :  { %2432 = vmatprep.subr.bf16.mxu0 %v2611_v59 }
 0x158   :  { %v2388_v62 = vpop.f32.mrf.mxu1 }
 0x15a   :  { %v456_v63 = vpop.f32.mrf.mxu1  ;;  %2433 = vmatpush3.bf16.msra.mxu0 %v2611_v59 }
 0x15b   :  { %v523_v0 = vpack.c.bf16 %v456_v63, %v453_v61  ;;  %2454 = vmatprep.subr.bf16.mxu0 %v2689_v5 }
 0x15c   :  { %v2389_v1 = vpop.f32.mrf.mxu1 }
 0x15d   :  { %2422 = vmatprep.mubr.msk.bf16.mxu0 %vm375_vm3, %v523_v0 }
 0x15e   :  { %v2364_v2 = vpop.f32.mrf.mxu0  ;;  %v461_v3 = vpop.f32.mrf.mxu1 }
 0x160   :  { %v270_v4 = vpop.f32.mrf.mxu0  ;;  %v2392_v6 = vpop.f32.mrf.mxu1 }
 0x162   :  { %v2365_v7 = vpop.f32.mrf.mxu0  ;;  %v464_v8 = vpop.f32.mrf.mxu1 }
 0x163   :  { %v524_v9 = vpack.c.bf16 %v464_v8, %v461_v3  ;;  %v512_v31 = vpack.c.bf16 %v2365_v7, %v2364_v2 }
 0x164   :  { %v273_v10 = vpop.f32.mrf.mxu0  ;;  %v2393_v11 = vpop.f32.mrf.mxu1 }
 0x165   :  { %2423 = vmatmul.mubr.msk.bf16.gmra.mxu0 %vm375_vm3, %v524_v9  ;;  %v511_v24 = vpack.c.bf16 %v273_v10, %v270_v4  ;;  %v2185_v4 = vld [vmem:[%s3252_s2] ss:$0 sm:$0xff] }
 0x166   :  { %v2368_v12 = vpop.f32.mrf.mxu0  ;;  %v469_v13 = vpop.f32.mrf.mxu1 }
 0x168   :  { %v286_v14 = vpop.f32.mrf.mxu0  ;;  %v2396_v15 = vpop.f32.mrf.mxu1 }
 0x16a   :  { %v2369_v16 = vpop.f32.mrf.mxu0  ;;  %v472_v17 = vpop.f32.mrf.mxu1 }
 0x16b   :  { %v525_v18 = vpack.c.bf16 %v472_v17, %v469_v13  ;;  %v514_v40 = vpack.c.bf16 %v2369_v16, %v2368_v12 }
 0x16c   :  { %v289_v19 = vpop.f32.mrf.mxu0  ;;  %v2397_v20 = vpop.f32.mrf.mxu1 }
 0x16d   :  { %2426 = vmatprep.mubr.msk.bf16.mxu0 %vm375_vm3, %v525_v18  ;;  %v513_v33 = vpack.c.bf16 %v289_v19, %v286_v14 }
 0x16e   :  { %v2372_v21 = vpop.f32.mrf.mxu0  ;;  %v477_v22 = vpop.f32.mrf.mxu1 }
 0x16f   :  { %v526_v23 = vpack.c.bf16 %v477_v22, %v477_v22  ;;  %v516_v47 = vpack.c.bf16 %v2372_v21, %v2372_v21 }
 0x170   :  { %v302_v25 = vpop.f32.mrf.mxu0  ;;  %v2400_v26 = vpop.f32.mrf.mxu1 }
 0x171   :  { %2427 = vmatmul.mubr.msk.bf16.gmra.mxu0 %vm375_vm3, %v526_v23 }
 0x172   :  { %v2373_v27 = vpop.f32.mrf.mxu0  ;;  %v2935_v28 = vpop.f32.mrf.mxu1  ;;  %2434 = vmatprep.mubr.msk.bf16.mxu0 %vm375_vm3, %v511_v24 }
 0x174   :  { %v2401_v29 = vpop.f32.mrf.mxu1  ;;  %v305_v38 = vpop.f32.mrf.mxu0 }
 0x175   :  { %v515_v41 = vpack.c.bf16 %v305_v38, %v302_v25 }
 0x176   :  { %v2938_v30 = vpop.f32.mrf.mxu1 }
 0x177   :  { %v1285_v32 = vpack.c.bf16 %v2938_v30, %v2935_v28  ;;  %v2622_v30 = vld [vmem:[%s3251_s1 + $0x98] sm:$0xff]  }
 0x178   :  { %v2404_v34 = vpop.f32.mrf.mxu1 }
 0x179   :  { %2435 = vmatmul.mubr.msk.bf16.vlgmr.msra.gmra.mxu0 %vm375_vm3, %v512_v31 }
 0x17a   :  { %v2943_v35 = vpop.f32.mrf.mxu1  ;;  %2438 = vmatprep.mubr.msk.bf16.mxu0 %vm375_vm3, %v513_v33 }
 0x17c   :  { %v2405_v36 = vpop.f32.mrf.mxu1 }
 0x17e   :  { %v2946_v39 = vpop.f32.mrf.mxu1 }
 0x180   :  { %v2408_v42 = vpop.f32.mrf.mxu1 }
 0x181   :  { %2439 = vmatmul.mubr.msk.bf16.gmra.mxu0 %vm375_vm3, %v514_v40 }
 0x182   :  { %v2949_v43 = vpop.f32.mrf.mxu1  ;;  %2442 = vmatprep.mubr.msk.bf16.mxu0 %vm375_vm3, %v515_v41 }
 0x183   :  { %v1520_v44 = vpack.c.bf16 %v2949_v43, %v2946_v39  ;;  %v2627_v39 = vld [vmem:[%s3251_s1 + $0xe0] sm:$0xff]   ;;  %v2628_v43 = vld [vmem:[%s3251_s1 + $0x78] sm:$0xff]  }
 0x184   :  { %v2409_v45 = vpop.f32.mrf.mxu1 }
 0x186   :  { %v2954_v46 = vpop.f32.mrf.mxu1 }
 0x188   :  { %v2412_v37 = vpop.f32.mrf.mxu1 }
 0x189   :  { %2443 = vmatmul.mubr.msk.bf16.gmra.mxu0 %vm375_vm3, %v516_v47 }
 0x18a   :  { %v504_v48 = vpop.f32.mrf.mxu1  ;;  %2458 = vmatprep.mubr.msk.bf16.mxu0 %vm2690_vm0, %v2689_v5 }
 0x18c   :  { %v2413_v49 = vpop.f32.mrf.mxu1 }
 0x215   :  { %v2420_v51 = vpop.f32.mrf.mxu0 }
 0x217   :  { %v591_v52 = vpop.f32.mrf.mxu0 }
 0x219   :  { %v2421_v53 = vpop.f32.mrf.mxu0 }
 0x21b   :  { %v594_v54 = vpop.f32.mrf.mxu0 }
 0x225   :  { %v2424_v55 = vpop.f32.mrf.mxu0 }
 0x227   :  { %v607_v56 = vpop.f32.mrf.mxu0 }
 0x229   :  { %v2425_v57 = vpop.f32.mrf.mxu0 }
 0x22b   :  { %v610_v58 = vpop.f32.mrf.mxu0 }
 0x231   :  { %v2428_v59 = vpop.f32.mrf.mxu0 }
 0x233   :  { %v623_v60 = vpop.f32.mrf.mxu0 }
 0x235   :  { %v2429_v61 = vpop.f32.mrf.mxu0 }
 0x237   :  { %v626_v62 = vpop.f32.mrf.mxu0 }
 0x239   :  { %v2436_v63 = vpop.f32.mrf.mxu0 }
 0x23a   :  { %v710_v3 = vadd.f32 %v2436_v63, %v2420_v51 }
 0x23b   :  { %v701_v0 = vpop.f32.mrf.mxu0 }
 0x23c   :  { %v702_v1 = vadd.f32 %v701_v0, %v591_v52  ;;  %v754_v11 = vadd.f32 %v2185_v4, %v710_v3 }
 0x23d   :  { %v2437_v2 = vpop.f32.mrf.mxu0 }
 0x23e   :  { %v752_v6 = vadd.f32 %v2185_v4, %v702_v1  ;;  %v713_v8 = vadd.f32 %v2437_v2, %v2421_v53  ;;  %v765_v21 = vmax.f32 %v754_v11, 0.0 }
 0x23f   :  { %v704_v7 = vpop.f32.mrf.mxu0 }
 0x240   :  { %v705_v9 = vadd.f32 %v704_v7, %v594_v54  ;;  %v763_v14 = vmax.f32 %v752_v6, 0.0  ;;  %v755_v16 = vadd.f32 %v2185_v4, %v713_v8 }
 0x241   :  { %v2440_v10 = vpop.f32.mrf.mxu0 }
 0x242   :  { %v753_v12 = vadd.f32 %v2185_v4, %v705_v9  ;;  %v726_v13 = vadd.f32 %v2440_v10, %v2424_v55  ;;  %v766_v26 = vmax.f32 %v755_v16, 0.0 }
 0x243   :  { %v717_v15 = vpop.f32.mrf.mxu0 }
 0x244   :  { %v764_v17 = vmax.f32 %v753_v12, 0.0  ;;  %v758_v18 = vadd.f32 %v2185_v4, %v726_v13  ;;  %v718_v19 = vadd.f32 %v717_v15, %v607_v56  ;;  %v2614_v12 = vld [vmem:[%s3251_s1 + $0xc8] sm:$0xff]   ;;  %v2615_v13 = vld [vmem:[%s3251_s1 + $0xc0] sm:$0xff]  }
 0x245   :  { %v2441_v20 = vpop.f32.mrf.mxu0  ;;  %2455 = vmatpush3.bf16.msra.mxu0 %v2614_v12 }
 0x246   :  { %v774_v22 = vmax.f32 %v763_v14, %v764_v17  ;;  %v756_v23 = vadd.f32 %v2185_v4, %v718_v19  ;;  %v729_v24 = vadd.f32 %v2441_v20, %v2425_v57  ;;  %v769_v42 = vmax.f32 %v758_v18, 0.0  ;;  %2456 = vmatprep.subr.bf16.mxu0 %v2689_v5 }
 0x247   :  { %v720_v25 = vpop.f32.mrf.mxu0 }
 0x248   :  { %v775_v27 = vmax.f32 %v774_v22, %v765_v21  ;;  %v2966_v29 = vadd.f32 %v2185_v4, %v729_v24  ;;  %v721_v31 = vadd.f32 %v720_v25, %v610_v58  ;;  %v767_v34 = vmax.f32 %v756_v23, 0.0 }
 0x249   :  { %v2444_v33 = vpop.f32.mrf.mxu0  ;;  %2457 = vmatpush3.bf16.msra.mxu0 %v2615_v13 }
 0x24a   :  { %v776_v36 = vmax.f32 %v775_v27, %v766_v26  ;;  %v757_v38 = vadd.f32 %v2185_v4, %v721_v31  ;;  %v742_v40 = vadd.f32 %v2444_v33, %v2428_v59  ;;  %v2186_v59 = vld [vmem:[%s3252_s2 + $0x5] ss:$0 sm:$0xff]  ;;  %2470 = vmatprep.subr.bf16.mxu0 %v2689_v5  ;;  %v770_v28 = vmax.f32 %v2966_v29, 0.0 }
 0x24b   :  { %v733_v41 = vpop.f32.mrf.mxu0  ;;  %v1521_v29 = vpack.c.bf16 %v2954_v46, %v2954_v46 }
 0x24c   :  { %v777_v45 = vmax.f32 %v776_v36, %v767_v34  ;;  %v768_v47 = vmax.f32 %v757_v38, 0.0  ;;  %v2968_v37 = vadd.f32 %v2185_v4, %v742_v40  ;;  %v734_v48 = vadd.f32 %v733_v41, %v623_v60 }
 0x24d   :  { %v2445_v49 = vpop.f32.mrf.mxu0 }
 0x24e   :  { %v782_v50 = vpack.c.bf16 %v777_v45, %v777_v45  ;;  %v2970_v51 = vpack.c.bf16 %v769_v42, %v768_v47  ;;  %v760_v52 = vadd.f32 %v2185_v4, %v734_v48 }
 0x24f   :  { %v736_v53 = vpop.f32.mrf.mxu0 }
 0x250   :  { %v737_v54 = vadd.f32 %v736_v53, %v626_v62  ;;  %2451 = vmatmul.mubr.msk.bf16.vlgmr.msra.gmra.mxu1 %vm375_vm3, %v782_v50  ;;  %v771_v56 = vmax.f32 %v760_v52, 0.0 }
 0x251   :  { %2466 = vmatprep.mubr.msk.bf16.mxu1 %vm2690_vm0, %v2689_v5  ;;  %2463 = vmatpush3.bf16.msra.mxu1 %v2614_v12 }
 0x252   :  { %v761_v55 = vadd.f32 %v2185_v4, %v737_v54  ;;  %2464 = vmatprep.subr.bf16.mxu1 %v2689_v5 }
 0x254   :  { %v772_v57 = vmax.f32 %v761_v55, 0.0 }
 0x255   :  { %2465 = vmatpush3.bf16.msra.mxu1 %v2615_v13 }
 0x256   :  { %v2975_v58 = vpack.c.bf16 %v772_v57, %v771_v56  ;;  %2478 = vmatprep.subr.bf16.mxu1 %v2689_v5 }
 0x310   :  { %v837_v60 = vpop.f32.mrf.mxu1 }
 0x311   :  { %v2980_v61 = vadd.f32 %v2186_v59, %v837_v60 }
 0x312   :  { %v2452_v63 = vpop.f32.mrf.mxu1 }
 0x313   :  { %2642 = vtanh.f32 %v2980_v61  ;;  %v2190_v2 = vmul.f32 -1.442695, %v2980_v61 }
 0x314   :  { %v840_v62 = vpop.f32.mrf.mxu1 }
 0x315   :  { %2644 = vpow2.f32 %v2190_v2 }
 0x316   :  { %v2453_v0 = vpop.f32.mrf.mxu1 }
 0x320   :  { %v2643_v1 = vpop.eup %2642 }
 0x321   :  { %856 = vrot.lane.b32.xlu0 %v2643_v1, %s2691_s14 }
 0x322   :  { %v2645_v3 = vpop.eup %2644 }
 0x323   :  { %v850_v4 = vadd.f32 1.0, %v2645_v3 }
 0x325   :  { %2646 = vrcp.f32 %v850_v4 }
 0x332   :  { %v2647_v6 = vpop.eup %2646 }
 0x333   :  { %v854_v9 = vmul.f32 0.0, %v2647_v6 }
 0x393   :  { %v857_v7 = vpop.permute.xlu0 %856 }
 0x394   :  { %v859_v8 = vmul.f32 %v2647_v6, %v857_v7 }
 0x396   :  { %861 = vrot.lane.b32.xlu1 %v859_v8, %s2692_s15 }
 0x408   :  { %v862_v10 = vpop.permute.xlu1 %861 }
 0x409   :  { %v864_v11 = vadd.f32 %v862_v10, %v854_v9 }
 0x40b   :  { %2648 = vtanh.f32 %v864_v11  ;;  %v942_v38 = vrot.slane %v864_v11, 6 }
 0x418   :  { %v2649_v14 = vpop.eup %2648 }
 0x419   :  { %867 = vrot.lane.b32.xlu0 %v2649_v14, %s2691_s14 }
 0x48b   :  { %v868_v15 = vpop.permute.xlu0 %867 }
 0x48c   :  { %v2997_v16 = vmul.f32 %v2647_v6, %v868_v15 }
 0x48e   :  { %v871_v17 = vpack.c.bf16 %v2997_v16, %v2997_v16 }
 0x490   :  { %873 = vrot.lane.b32.xlu1 %v871_v17, %s2692_s15 }
 0x502   :  { %v874_v18 = vpop.permute.xlu1 %873 }
 0x503   :  { %2459 = vmatmul.mubr.msk.bf16.vlgmr.msra.gmra.mxu0 %vm375_vm3, %v874_v18 }
 0x504   :  { %2471 = vmatpush3.bf16.msra.mxu0 %v2614_v12  ;;  %2474 = vmatprep.mubr.msk.bf16.mxu0 %vm2690_vm0, %v2689_v5 }
 0x505   :  { %2472 = vmatprep.subr.bf16.mxu0 %v2689_v5 }
 0x508   :  { %2473 = vmatpush3.bf16.msra.mxu0 %v2615_v13 }
 0x509   :  { %2486 = vmatprep.subr.bf16.mxu0 %v2689_v5 }
 0x5c3   :  { %v924_v19 = vpop.f32.mrf.mxu0 }
 0x5c4   :  { %v931_v20 = vrot.slane %v924_v19, 6 }
 0x5c5   :  { %v2460_v21 = vpop.f32.mrf.mxu0 }
 0x5c6   :  { %v933_v22 = vadd.f32 %v931_v20, %v2980_v61 }
 0x5c7   :  { %v927_v23 = vpop.f32.mrf.mxu0 }
 0x5c8   :  { %2650 = vtanh.f32 %v933_v22  ;;  %v2194_v26 = vmul.f32 -1.442695, %v933_v22 }
 0x5c9   :  { %v2461_v24 = vpop.f32.mrf.mxu0 }
 0x5ca   :  { %2652 = vpow2.f32 %v2194_v26 }
 0x5d5   :  { %v2651_v25 = vpop.eup %2650 }
 0x5d6   :  { %946 = vrot.lane.b32.xlu0 %v2651_v25, %s2691_s14 }
 0x5d7   :  { %v2653_v27 = vpop.eup %2652 }
 0x5d8   :  { %v937_v31 = vadd.f32 1.0, %v2653_v27 }
 0x5da   :  { %2654 = vrcp.f32 %v937_v31 }
 0x5e7   :  { %v2655_v33 = vpop.eup %2654 }
 0x5e8   :  { %v944_v40 = vmul.f32 %v2655_v33, %v942_v38 }
 0x648   :  { %v947_v34 = vpop.permute.xlu0 %946 }
 0x649   :  { %v949_v36 = vmul.f32 %v2655_v33, %v947_v34 }
 0x64b   :  { %951 = vrot.lane.b32.xlu1 %v949_v36, %s2692_s15 }
 0x6bd   :  { %v952_v41 = vpop.permute.xlu1 %951 }
 0x6be   :  { %v954_v42 = vadd.f32 %v952_v41, %v944_v40  ;;  %v2616_v40 = vld [vmem:[%s3251_s1 + $0xd8] sm:$0xff]   ;;  %v2617_v41 = vld [vmem:[%s3251_s1 + $0xd0] sm:$0xff]  }
 0x6c0   :  { %2656 = vtanh.f32 %v954_v42  ;;  %v1021_v4 = vrot.slane %v954_v42, 6  ;;  %v2618_v42 = vld [vmem:[%s3251_s1 + $0x68] sm:$0xff]  }
 0x6cd   :  { %v2657_v45 = vpop.eup %2656 }
 0x6ce   :  { %957 = vrot.lane.b32.xlu0 %v2657_v45, %s2691_s14 }
 0x740   :  { %v958_v47 = vpop.permute.xlu0 %957 }
 0x741   :  { %v960_v48 = vmul.f32 %v2655_v33, %v958_v47 }
 0x743   :  { %v961_v49 = vpack.c.bf16 %v960_v48, %v960_v48  ;;  %v1120_v12 = vsel %vm1119_vm4, %v2997_v16, %v960_v48 }
 0x745   :  { %v963_v50 = vrot.slane %v961_v49, 1 }
 0x747   :  { %964 = vrot.lane.b32.xlu1 %v963_v50, %s2692_s15 }
 0x7b9   :  { %v965_v52 = vpop.permute.xlu1 %964 }
 0x7ba   :  { %2467 = vmatmul.mubr.msk.bf16.vlgmr.msra.gmra.mxu1 %vm375_vm3, %v965_v52  ;;  %v2624_v52 = vld [vmem:[%s3251_s1 + $0xf8] sm:$0xff]  }
 0x7bb   :  { %2482 = vmatprep.mubr.msk.bf16.mxu1 %vm2690_vm0, %v2689_v5  ;;  %2479 = vmatpush3.bf16.msra.mxu1 %v2616_v40  ;;  %v2203_v40 = vld [vmem:[%s3252_s2 + $0x7] ss:$0 sm:$0xff] }
 0x7bc   :  { %2480 = vmatprep.subr.bf16.mxu1 %v2689_v5 }
 0x7bf   :  { %2481 = vmatpush3.bf16.msra.mxu1 %v2617_v41 }
 0x7c0   :  { %2498 = vmatprep.subr.bf16.mxu1 %v2618_v42 }
 0x87a   :  { %v1003_v53 = vpop.f32.mrf.mxu1 }
 0x87b   :  { %v1010_v54 = vrot.slane %v1003_v53, 4  ;;  %v2625_v53 = vld [vmem:[%s3251_s1 + $0xf0] sm:$0xff]  }
 0x87c   :  { %v2468_v55 = vpop.f32.mrf.mxu1 }
 0x87d   :  { %v1012_v56 = vadd.f32 %v1010_v54, %v2980_v61  ;;  %v2619_v54 = vld [vmem:[%s3251_s1 + $0x60] sm:$0xff]  }
 0x87e   :  { %v1006_v57 = vpop.f32.mrf.mxu1 }
 0x87f   :  { %2658 = vtanh.f32 %v1012_v56  ;;  %v2196_v63 = vmul.f32 -1.442695, %v1012_v56  ;;  %v2620_v56 = vld [vmem:[%s3251_s1 + $0x58] sm:$0xff]   ;;  %v1286_v57 = vpack.c.bf16 %v2943_v35, %v2943_v35  ;;  %v2623_v35 = vld [vmem:[%s3251_s1 + $0x90] sm:$0xff]  }
 0x880   :  { %v2469_v59 = vpop.f32.mrf.mxu1 }
 0x881   :  { %2660 = vpow2.f32 %v2196_v63  ;;  %v2621_v59 = vld [vmem:[%s3251_s1 + $0x50] sm:$0xff]  }
 0x88c   :  { %v2659_v60 = vpop.eup %2658 }
 0x88d   :  { %1025 = vrot.lane.b32.xlu0 %v2659_v60, %s2691_s14 }
 0x88e   :  { %v2661_v62 = vpop.eup %2660 }
 0x88f   :  { %v1016_v0 = vadd.f32 1.0, %v2661_v62 }
 0x891   :  { %2662 = vrcp.f32 %v1016_v0 }
 0x89e   :  { %v2663_v1 = vpop.eup %2662 }
 0x89f   :  { %v1023_v6 = vmul.f32 %v2663_v1, %v1021_v4 }
 0x8ff   :  { %v1026_v2 = vpop.permute.xlu0 %1025 }
 0x900   :  { %v1028_v3 = vmul.f32 %v2663_v1, %v1026_v2  ;;  %v2629_v2 = vld [vmem:[%s3251_s1 + $0x70] sm:$0xff]  }
 0x902   :  { %1030 = vrot.lane.b32.xlu1 %v1028_v3, %s2692_s15 }
 0x974   :  { %v1031_v7 = vpop.permute.xlu1 %1030 }
 0x975   :  { %v1033_v8 = vadd.f32 %v1031_v7, %v1023_v6  ;;  %v2630_v6 = vld [vmem:[%s3251_s1 + $0x88] sm:$0xff]  }
 0x977   :  { %2664 = vtanh.f32 %v1033_v8  ;;  %v1100_v34 = vrot.slane %v1033_v8, 6 }
 0x984   :  { %v2665_v9 = vpop.eup %2664 }
 0x985   :  { %1036 = vrot.lane.b32.xlu0 %v2665_v9, %s2691_s14 }
 0x9f7   :  { %v1037_v10 = vpop.permute.xlu0 %1036 }
 0x9f8   :  { %v1039_v11 = vmul.f32 %v2663_v1, %v1037_v10 }
 0x9fa   :  { %v1040_v13 = vpack.c.bf16 %v1039_v11, %v1039_v11  ;;  %v1122_v14 = vsel %vm1121_vm5, %v1120_v12, %v1039_v11 }
 0x9fc   :  { %v1042_v15 = vrot.slane %v1040_v13, 2  ;;  %v2217_v13 = vld [vmem:[%s3252_s2 + $0x1] ss:$0 sm:$0xff] }
 0x9fe   :  { %1043 = vrot.lane.b32.xlu1 %v1042_v15, %s2692_s15 }
 0xa70   :  { %v1044_v17 = vpop.permute.xlu1 %1043 }
 0xa71   :  { %2475 = vmatmul.mubr.msk.bf16.vlgmr.msra.gmra.mxu0 %vm375_vm3, %v1044_v17 }
 0xa72   :  { %2494 = vmatprep.mubr.msk.bf16.mxu0 %vm2690_vm0, %v2689_v5  ;;  %2487 = vmatpush3.bf16.msra.mxu0 %v2624_v52 }
 0xa73   :  { %2488 = vmatprep.subr.bf16.mxu0 %v2689_v5 }
 0xa76   :  { %2489 = vmatpush3.bf16.msra.mxu0 %v2625_v53 }
 0xa77   :  { %2490 = vmatprep.subr.bf16.mxu0 %v2689_v5 }
 0xb31   :  { %v1082_v18 = vpop.f32.mrf.mxu0 }
 0xb32   :  { %v1089_v19 = vrot.slane %v1082_v18, 2 }
 0xb33   :  { %v2476_v20 = vpop.f32.mrf.mxu0 }
 0xb34   :  { %v1091_v21 = vadd.f32 %v1089_v19, %v2980_v61 }
 0xb35   :  { %v1085_v22 = vpop.f32.mrf.mxu0 }
 0xb36   :  { %2666 = vtanh.f32 %v1091_v21  ;;  %v2198_v24 = vmul.f32 -1.442695, %v1091_v21 }
 0xb37   :  { %v2477_v23 = vpop.f32.mrf.mxu0 }
 0xb38   :  { %2668 = vpow2.f32 %v2198_v24 }
 0xb43   :  { %v2667_v16 = vpop.eup %2666 }
 0xb44   :  { %1104 = vrot.lane.b32.xlu0 %v2667_v16, %s2691_s14 }
 0xb45   :  { %v2669_v25 = vpop.eup %2668 }
 0xb46   :  { %v1095_v26 = vadd.f32 1.0, %v2669_v25 }
 0xb48   :  { %2670 = vrcp.f32 %v1095_v26 }
 0xb55   :  { %v2671_v27 = vpop.eup %2670 }
 0xb56   :  { %v1102_v36 = vmul.f32 %v2671_v27, %v1100_v34  ;;  %v773_v34 = vmax.f32 %v2968_v37, 0.0  ;;  %v2633_v37 = vld [vmem:[%s3251_s1 + $0x100] sm:$0xff]  }
 0xbb6   :  { %v1105_v31 = vpop.permute.xlu0 %1104 }
 0xbb7   :  { %v1107_v33 = vmul.f32 %v2671_v27, %v1105_v31 }
 0xbb9   :  { %1109 = vrot.lane.b32.xlu1 %v1107_v33, %s2692_s15  ;;  %v2631_v33 = vld [vmem:[%s3251_s1 + $0x80] sm:$0xff]  }
 0xc2b   :  { %v1110_v38 = vpop.permute.xlu1 %1109 }
 0xc2c   :  { %v1112_v61 = vadd.f32 %v1110_v38, %v1102_v36  ;;  %v1515_v36 = vpack.c.bf16 %v773_v34, %v773_v34  ;;  %v2632_v38 = vld [vmem:[%s3251_s1 + $0x108] sm:$0xff]  }
 0xc2e   :  { %2672 = vtanh.f32 %v1112_v61  ;;  %v2635_v61 = vld [vmem:[%s3251_s1 + $0xa0] sm:$0xff]  }
 0xc3b   :  { %v2673_v45 = vpop.eup %2672 }
 0xc3c   :  { %1115 = vrot.lane.b32.xlu0 %v2673_v45, %s2691_s14 }
 0xcae   :  { %v1116_v47 = vpop.permute.xlu0 %1115 }
 0xcaf   :  { %v1118_v48 = vmul.f32 %v2671_v27, %v1116_v47 }
 0xcb1   :  { %v1124_v49 = vsel %vm1123_vm6, %v1122_v14, %v1118_v48 }
 0xcb2   :  { %v1129_v50 = vpack.c.bf16 %v1124_v49, %v1124_v49  ;;  %v2218_v49 = vld [vmem:[%s3252_s2 + $0x2] ss:$0 sm:$0xff] }
 0xcb4   :  { %1136 = vrot.lane.b32.xlu1 %v1129_v50, %s2692_s15 }
 0xd26   :  { %v1137_v55 = vpop.permute.xlu1 %1136 }
 0xd27   :  { %2483 = vmatmul.mubr.msk.bf16.vlgmr.msra.gmra.mxu1 %vm375_vm3, %v1137_v55 }
 0xd28   :  { %2499 = vmatpush3.bf16.msra.mxu1 %v2618_v42  ;;  %2502 = vmatprep.mubr.msk.bf16.mxu1 %vm375_vm3, %v1285_v32  ;;  %v1280_v32 = vpack.c.bf16 %v770_v28, %v770_v28 }
 0xd29   :  { %2500 = vmatprep.subr.bf16.mxu1 %v2619_v54 }
 0xd2c   :  { %2501 = vmatpush3.bf16.msra.mxu1 %v2619_v54 }
 0xd2d   :  { %2506 = vmatprep.subr.bf16.mxu1 %v2620_v56 }
 0xd2f   :  { %2503 = vmatmul.mubr.msk.bf16.vlgmr.msra.gmra.mxu1 %vm375_vm3, %v1286_v57 }
 0xd30   :  { %2507 = vmatpush3.bf16.msra.mxu1 %v2620_v56  ;;  %2510 = vmatprep.mubr.msk.bf16.mxu1 %vm375_vm3, %v2970_v51  ;;  %v2626_v51 = vld [vmem:[%s3251_s1 + $0xe8] sm:$0xff]  }
 0xd31   :  { %2508 = vmatprep.subr.bf16.mxu1 %v2621_v59  ;;  %2491 = vmatpush3.bf16.msra.mxu0 %v2626_v51  ;;  %v2231_v51 = vld [vmem:[%s3252_s2 + $0x3] ss:$0 sm:$0xff] }
 0xd32   :  { %2492 = vmatprep.subr.bf16.mxu0 %v2689_v5 }
 0xd34   :  { %2509 = vmatpush3.bf16.msra.mxu1 %v2621_v59 }
 0xd35   :  { %2522 = vmatprep.subr.bf16.mxu1 %v2622_v30  ;;  %2493 = vmatpush3.bf16.msra.mxu0 %v2627_v39 }
 0xd36   :  { %2514 = vmatprep.subr.bf16.mxu0 %v2628_v43 }
 0xd37   :  { %2511 = vmatmul.mubr.msk.bf16.vlgmr.msra.gmra.mxu1 %vm375_vm3, %v1280_v32 }
 0xd38   :  { %2523 = vmatpush3.bf16.msra.mxu1 %v2622_v30  ;;  %2526 = vmatprep.mubr.msk.bf16.mxu1 %vm375_vm3, %v1520_v44  ;;  %v2199_v44 = vld [vmem:[%s3252_s2 + $0x6] ss:$0 sm:$0xff] }
 0xd39   :  { %2524 = vmatprep.subr.bf16.mxu1 %v2623_v35 }
 0xd3c   :  { %2525 = vmatpush3.bf16.msra.mxu1 %v2623_v35 }
 0xd3f   :  { %2527 = vmatmul.mubr.msk.bf16.vlgmr.msra.gmra.mxu1 %vm375_vm3, %v1521_v29 }
 0xde7   :  { %v1187_v46 = vpop.f32.mrf.mxu1 }
 0xde8   :  { %v1188_v60 = vadd.f32 %v2199_v44, %v1187_v46 }
 0xde9   :  { %v2484_v63 = vpop.f32.mrf.mxu1 }
 0xdea   :  { %v1193_v62 = vmax.f32 %v1188_v60, 0.0 }
 0xdeb   :  { %v1190_v0 = vpop.f32.mrf.mxu1 }
 0xdec   :  { %v1202_v1 = vpack.c.bf16 %v1193_v62, %v1193_v62 }
 0xded   :  { %v2485_v3 = vpop.f32.mrf.mxu1 }
 0xdee   :  { %2495 = vmatmul.mubr.msk.bf16.vlgmr.msra.gmra.mxu0 %vm217_vm10, %v1202_v1 }
 0xdef   :  { %v2504_v4 = vpop.f32.mrf.mxu1  ;;  %2515 = vmatpush3.bf16.msra.mxu0 %v2628_v43 }
 0xdf0   :  { %2516 = vmatprep.subr.bf16.mxu0 %v2629_v2 }
 0xdf1   :  { %v1339_v7 = vpop.f32.mrf.mxu1 }
 0xdf3   :  { %v2505_v8 = vpop.f32.mrf.mxu1  ;;  %2517 = vmatpush3.bf16.msra.mxu0 %v2629_v2 }
 0xdf4   :  { %2530 = vmatprep.subr.bf16.mxu0 %v2630_v6  ;;  %v2637_v8 = vld [vmem:[%s3251_s1 + $0x110] sm:$0xff]  }
 0xdf5   :  { %v1342_v9 = vpop.f32.mrf.mxu1 }
 0xdf7   :  { %v2512_v10 = vpop.f32.mrf.mxu1 }
 0xdf8   :  { %v1414_v11 = vadd.f32 %v2512_v10, %v2504_v4 }
 0xdf9   :  { %v1405_v12 = vpop.f32.mrf.mxu1 }
 0xdfa   :  { %v1406_v14 = vadd.f32 %v1405_v12, %v1339_v7  ;;  %v1426_v17 = vadd.f32 %v2217_v13, %v1414_v11  ;;  %v2636_v7 = vld [vmem:[%s3251_s1 + $0x118] sm:$0xff]  }
 0xdfb   :  { %v2513_v15 = vpop.f32.mrf.mxu1 }
 0xdfc   :  { %v1424_v19 = vadd.f32 %v2217_v13, %v1406_v14  ;;  %v1429_v23 = vmax.f32 %v1426_v17, 0.0 }
 0xdfd   :  { %v1408_v18 = vpop.f32.mrf.mxu1 }
 0xdfe   :  { %v1409_v20 = vadd.f32 %v1408_v18, %v1342_v9  ;;  %v1427_v24 = vmax.f32 %v1424_v19, 0.0  ;;  %v1435_v31 = vpack.c.bf16 %v1429_v23, %v1429_v23  ;;  %v2237_v9 = vld [vmem:[%s3252_s2 + $0x8] ss:$0 sm:$0xff] }
 0xdff   :  { %v2528_v21 = vpop.f32.mrf.mxu1 }
 0xe00   :  { %v1425_v22 = vadd.f32 %v2217_v13, %v1409_v20 }
 0xe01   :  { %v1574_v16 = vpop.f32.mrf.mxu1 }
 0xe02   :  { %v1428_v25 = vmax.f32 %v1425_v22, 0.0 }
 0xe03   :  { %v2529_v26 = vpop.f32.mrf.mxu1 }
 0xe04   :  { %v1434_v27 = vpack.c.bf16 %v1428_v25, %v1427_v24 }
 0xe05   :  { %v1577_v44 = vpop.f32.mrf.mxu1 }
 0xe06   :  { %2518 = vmatprep.mubr.msk.bf16.mxu0 %vm375_vm3, %v1434_v27 }
 0xe07   :  { %2519 = vmatmul.mubr.msk.bf16.vlgmr.msra.gmra.mxu0 %vm375_vm3, %v1435_v31 }
 0xe08   :  { %2531 = vmatpush3.bf16.msra.mxu0 %v2630_v6  ;;  %2534 = vmatprep.mubr.msk.bf16.mxu0 %vm375_vm3, %v2975_v58  ;;  %v2634_v58 = vld [vmem:[%s3251_s1 + $0xa8] sm:$0xff]  }
 0xe09   :  { %2532 = vmatprep.subr.bf16.mxu0 %v2631_v33  ;;  %2538 = vmatprep.subr.bf16.mxu1 %v2634_v58 }
 0xe0a   :  { %2539 = vmatpush3.bf16.msra.mxu1 %v2634_v58 }
 0xe0b   :  { %2540 = vmatprep.subr.bf16.mxu1 %v2635_v61 }
 0xe0c   :  { %2533 = vmatpush3.bf16.msra.mxu0 %v2631_v33 }
 0xe0d   :  { %2546 = vmatprep.subr.bf16.mxu0 %v2689_v5 }
 0xe0e   :  { %2541 = vmatpush3.bf16.msra.mxu1 %v2635_v61 }
 0xe0f   :  { %2535 = vmatmul.mubr.msk.bf16.vlgmr.msra.gmra.mxu0 %vm375_vm3, %v1515_v36  ;;  %2562 = vmatprep.subr.bf16.mxu1 %v2689_v5 }
 0xe10   :  { %2550 = vmatprep.mubr.msk.bf16.mxu0 %vm2690_vm0, %v2689_v5  ;;  %2547 = vmatpush3.bf16.msra.mxu0 %v2632_v38 }
 0xe11   :  { %2548 = vmatprep.subr.bf16.mxu0 %v2689_v5 }
 0xe14   :  { %2549 = vmatpush3.bf16.msra.mxu0 %v2633_v37  ;;  %v2243_v37 = vld [vmem:[%s3252_s2 + $0x9] ss:$0 sm:$0xff] }
 0xe15   :  { %2578 = vmatprep.subr.bf16.mxu0 %v2689_v5 }
 0xeae   :  { %v1269_v41 = vpop.f32.mrf.mxu0 }
 0xeaf   :  { %v3134_v42 = vadd.f32 %v2203_v40, %v1269_v41 }
 0xeb0   :  { %v2496_v45 = vpop.f32.mrf.mxu0 }
 0xeb1   :  { %1932 = vrot.lane.b32.xlu0 %v3134_v42, %s2693_s10 }
 0xeb2   :  { %v1272_v47 = vpop.f32.mrf.mxu0 }
 0xeb4   :  { %v2497_v48 = vpop.f32.mrf.mxu0 }
 0xec7   :  { %v2520_v50 = vpop.f32.mrf.mxu0 }
 0xec8   :  { %v3140_v52 = vadd.f32 %v2520_v50, %v2218_v49 }
 0xec9   :  { %v1493_v53 = vpop.f32.mrf.mxu0 }
 0xeca   :  { %v3142_v55 = vadd.f32 %v2218_v49, %v1493_v53  ;;  %v1509_v24 = vmax.f32 %v3140_v52, 0.0 }
 0xecb   :  { %v2521_v54 = vpop.f32.mrf.mxu0 }
 0xecc   :  { %v1507_v28 = vmax.f32 %v3142_v55, 0.0 }
 0xecd   :  { %v1496_v56 = vpop.f32.mrf.mxu0 }
 0xece   :  { %v3144_v57 = vadd.f32 %v2218_v49, %v1496_v56 }
 0xecf   :  { %v2536_v59 = vpop.f32.mrf.mxu0 }
 0xed0   :  { %v1508_v30 = vmax.f32 %v3144_v57, 0.0  ;;  %v1649_v32 = vadd.f32 %v2536_v59, %v2528_v21  ;;  %v2232_v21 = vld [vmem:[%s3252_s2 + $0x4] ss:$0 sm:$0xff] }
 0xed1   :  { %v1640_v35 = vpop.f32.mrf.mxu0 }
 0xed2   :  { %v1749_v29 = vpack.c.bf16 %v1508_v30, %v1507_v28  ;;  %v1641_v39 = vadd.f32 %v1640_v35, %v1574_v16  ;;  %v1661_v46 = vadd.f32 %v2231_v51, %v1649_v32 }
 0xed3   :  { %v2537_v43 = vpop.f32.mrf.mxu0 }
 0xed4   :  { %2551 = vmatmul.mubr.msk.bf16.vlgmr.msra.gmra.mxu0 %vm375_vm3, %v1749_v29  ;;  %v1659_v63 = vadd.f32 %v2231_v51, %v1641_v39  ;;  %v1664_v1 = vmax.f32 %v1661_v46, 0.0 }
 0xed5   :  { %v1643_v60 = vpop.f32.mrf.mxu0  ;;  %2554 = vmatprep.mubr.msk.bf16.mxu0 %vm2690_vm0, %v2689_v5 }
 0xed6   :  { %v1644_v62 = vadd.f32 %v1643_v60, %v1577_v44  ;;  %v1662_v2 = vmax.f32 %v1659_v63, 0.0  ;;  %v1670_v6 = vpack.c.bf16 %v1664_v1, %v1664_v1 }
 0xed8   :  { %v1660_v0 = vadd.f32 %v2231_v51, %v1644_v62 }
 0xeda   :  { %v1663_v3 = vmax.f32 %v1660_v0, 0.0 }
 0xedc   :  { %v1669_v4 = vpack.c.bf16 %v1663_v3, %v1662_v2 }
 0xede   :  { %2542 = vmatprep.mubr.msk.bf16.mxu1 %vm375_vm3, %v1669_v4  ;;  %v2638_v4 = vld [vmem:[%s3251_s1 + $0x128] sm:$0xff]  }
 0xedf   :  { %2543 = vmatmul.mubr.msk.bf16.vlgmr.msra.gmra.mxu1 %vm375_vm3, %v1670_v6  ;;  %2579 = vmatpush3.bf16.msra.mxu0 %v2638_v4  ;;  %v2639_v6 = vld [vmem:[%s3251_s1 + $0x120] sm:$0xff]  }
 0xee0   :  { %2566 = vmatprep.mubr.msk.bf16.mxu1 %vm2690_vm0, %v2689_v5  ;;  %2563 = vmatpush3.bf16.msra.mxu1 %v2636_v7  ;;  %v2640_v7 = vld [vmem:[%s3251_s1 + $0x138] sm:$0xff]  }
 0xee1   :  { %2564 = vmatprep.subr.bf16.mxu1 %v2689_v5  ;;  %2580 = vmatprep.subr.bf16.mxu0 %v2689_v5 }
 0xee3   :  { %2581 = vmatpush3.bf16.msra.mxu0 %v2639_v6 }
 0xee4   :  { %2565 = vmatpush3.bf16.msra.mxu1 %v2637_v8  ;;  %v2641_v8 = vld [vmem:[%s3251_s1 + $0x130] sm:$0xff]  }
 0xee5   :  { %2586 = vmatprep.subr.bf16.mxu1 %v2689_v5 }
 0xf23   :  { %v1933_v47 = vpop.permute.xlu0 %1932 }
 0xf94   :  { %v1812_v10 = vpop.f32.mrf.mxu0 }
 0xf95   :  { %v1813_v12 = vadd.f32 %v2237_v9, %v1812_v10 }
 0xf96   :  { %v2552_v11 = vpop.f32.mrf.mxu0 }
 0xf97   :  { %v1835_v17 = vmax.f32 %v1813_v12, 0.0 }
 0xf98   :  { %v1815_v13 = vpop.f32.mrf.mxu0 }
 0xf99   :  { %v1816_v14 = vadd.f32 %v2237_v9, %v1815_v13 }
 0xf9a   :  { %v2553_v15 = vpop.f32.mrf.mxu0 }
 0xf9b   :  { %v1836_v18 = vmax.f32 %v1816_v14, 0.0 }
 0xf9d   :  { %v1845_v19 = vpack.c.bf16 %v1836_v18, %v1835_v17 }
 0xf9f   :  { %v2544_v20 = vpop.f32.mrf.mxu1  ;;  %2567 = vmatmul.mubr.msk.bf16.vlgmr.msra.gmra.mxu1 %vm375_vm3, %v1845_v19 }
 0xfa0   :  { %2570 = vmatprep.mubr.msk.bf16.mxu1 %vm2690_vm0, %v2689_v5  ;;  %v3189_v33 = vadd.f32 %v2544_v20, %v2232_v21  ;;  %2587 = vmatpush3.bf16.msra.mxu1 %v2640_v7 }
 0xfa1   :  { %v1728_v22 = vpop.f32.mrf.mxu1  ;;  %2588 = vmatprep.subr.bf16.mxu1 %v2689_v5 }
 0xfa2   :  { %v3179_v23 = vadd.f32 %v2232_v21, %v1728_v22  ;;  %v1744_v36 = vmax.f32 %v3189_v33, 0.0 }
 0xfa3   :  { %v2545_v16 = vpop.f32.mrf.mxu1 }
 0xfa4   :  { %v1742_v25 = vmax.f32 %v3179_v23, 0.0  ;;  %2589 = vmatpush3.bf16.msra.mxu1 %v2641_v8  ;;  %v2249_v23 = vld [vmem:[%s3252_s2 + $0xa] ss:$0 sm:$0xff] }
 0xfa5   :  { %v1731_v26 = vpop.f32.mrf.mxu1 }
 0xfa6   :  { %v1750_v27 = vpack.c.bf16 %v1742_v25, %v1509_v24  ;;  %v3187_v31 = vadd.f32 %v2232_v21, %v1731_v26 }
 0xfa8   :  { %2555 = vmatmul.mubr.msk.bf16.gmra.mxu0 %vm375_vm3, %v1750_v27  ;;  %v1743_v34 = vmax.f32 %v3187_v31, 0.0 }
 0xfa9   :  { %2558 = vmatprep.mubr.msk.bf16.mxu0 %vm2690_vm0, %v2689_v5 }
 0xfaa   :  { %v1751_v38 = vpack.c.bf16 %v1744_v36, %v1743_v34 }
 0xfb0   :  { %2559 = vmatmul.mubr.msk.bf16.gmra.mxu0 %vm375_vm3, %v1751_v38 }
 0xfb1   :  { %2582 = vmatprep.mubr.msk.bf16.mxu0 %vm2690_vm0, %v2689_v5 }
0x105f   :  { %v1908_v58 = vpop.f32.mrf.mxu1 }
0x1060   :  { %v1909_v40 = vadd.f32 %v2243_v37, %v1908_v58 }
0x1061   :  { %v2568_v61 = vpop.f32.mrf.mxu1 }
0x1062   :  { %v1935_v49 = vadd.f32 %v1933_v47, %v1909_v40 }
0x1063   :  { %v1911_v41 = vpop.f32.mrf.mxu1 }
0x1064   :  { %v1912_v45 = vadd.f32 %v2243_v37, %v1911_v41 }
0x1065   :  { %v2569_v48 = vpop.f32.mrf.mxu1 }
0x1066   :  { %v1936_v50 = vadd.f32 %v1933_v47, %v1912_v45 }
0x1068   :  { %v1941_v53 = vmax.f32 %v1935_v49, %v1936_v50  ;;  %v1820_v54 = vpop.f32.mrf.mxu0 }
0x1069   :  { %v1821_v59 = vadd.f32 %v2237_v9, %v1820_v54 }
0x106a   :  { %v2556_v56 = vpop.f32.mrf.mxu0 }
0x106b   :  { %v1837_v51 = vmax.f32 %v1821_v59, 0.0 }
0x106c   :  { %v1823_v32 = vpop.f32.mrf.mxu0 }
0x106d   :  { %v1824_v35 = vadd.f32 %v2237_v9, %v1823_v32 }
0x106e   :  { %v2557_v29 = vpop.f32.mrf.mxu0 }
0x106f   :  { %v1838_v39 = vmax.f32 %v1824_v35, 0.0 }
0x1070   :  { %v1828_v43 = vpop.f32.mrf.mxu0 }
0x1071   :  { %v1846_v44 = vpack.c.bf16 %v1838_v39, %v1837_v51  ;;  %v1829_v60 = vadd.f32 %v2237_v9, %v1828_v43 }
0x1072   :  { %v2560_v46 = vpop.f32.mrf.mxu0 }
0x1073   :  { %2571 = vmatmul.mubr.msk.bf16.gmra.mxu1 %vm375_vm3, %v1846_v44  ;;  %v1839_v1 = vmax.f32 %v1829_v60, 0.0 }
0x1074   :  { %v1831_v63 = vpop.f32.mrf.mxu0  ;;  %2574 = vmatprep.mubr.msk.bf16.mxu1 %vm2690_vm0, %v2689_v5 }
0x1075   :  { %v1832_v62 = vadd.f32 %v2237_v9, %v1831_v63 }
0x1076   :  { %v2561_v0 = vpop.f32.mrf.mxu0 }
0x1077   :  { %v1840_v2 = vmax.f32 %v1832_v62, 0.0 }
0x1079   :  { %v1847_v3 = vpack.c.bf16 %v1840_v2, %v1839_v1 }
0x107b   :  { %2575 = vmatmul.mubr.msk.bf16.gmra.mxu1 %vm375_vm3, %v1847_v3 }
0x107c   :  { %2590 = vmatprep.mubr.msk.bf16.mxu1 %vm2690_vm0, %v2689_v5  ;;  %vm2114_vm0 = vcmask 130048  }
0x1133   :  { %v1916_v9 = vpop.f32.mrf.mxu1 }
0x1134   :  { %v1917_v11 = vadd.f32 %v2243_v37, %v1916_v9 }
0x1135   :  { %v2572_v10 = vpop.f32.mrf.mxu1 }
0x1136   :  { %v1937_v15 = vadd.f32 %v1933_v47, %v1917_v11 }
0x1137   :  { %v1919_v12 = vpop.f32.mrf.mxu1 }
0x1138   :  { %v1920_v13 = vadd.f32 %v2243_v37, %v1919_v12  ;;  %v1942_v21 = vmax.f32 %v1941_v53, %v1937_v15 }
0x1139   :  { %v2573_v14 = vpop.f32.mrf.mxu1 }
0x113a   :  { %v1938_v18 = vadd.f32 %v1933_v47, %v1920_v13 }
0x113b   :  { %v1924_v17 = vpop.f32.mrf.mxu1 }
0x113c   :  { %v1925_v19 = vadd.f32 %v2243_v37, %v1924_v17  ;;  %v1943_v26 = vmax.f32 %v1942_v21, %v1938_v18 }
0x113d   :  { %v2576_v20 = vpop.f32.mrf.mxu1 }
0x113e   :  { %v1939_v22 = vadd.f32 %v1933_v47, %v1925_v19 }
0x113f   :  { %v1927_v16 = vpop.f32.mrf.mxu1 }
0x1140   :  { %v1928_v27 = vadd.f32 %v2243_v37, %v1927_v16  ;;  %v1944_v58 = vmax.f32 %v1943_v26, %v1939_v22 }
0x1141   :  { %v2577_v38 = vpop.f32.mrf.mxu1 }
0x1142   :  { %v1940_v5 = vadd.f32 %v1933_v47, %v1928_v27 }
0x1144   :  { %v1945_v61 = vmax.f32 %v1944_v58, %v1940_v5 }
0x1146   :  { %v1946_v40 = vsub.f32 %v1935_v49, %v1945_v61  ;;  %v1947_v41 = vsub.f32 %v1936_v50, %v1945_v61  ;;  %v1948_v45 = vsub.f32 %v1937_v15, %v1945_v61  ;;  %v1949_v48 = vsub.f32 %v1938_v18, %v1945_v61 }
0x1147   :  { %v1950_v54 = vsub.f32 %v1939_v22, %v1945_v61  ;;  %v1951_v35 = vsub.f32 %v1940_v5, %v1945_v61 }
0x1148   :  { %v1952_v56 = vmul.f32 1.442695, %v1946_v40  ;;  %v1954_v59 = vmul.f32 1.442695, %v1947_v41  ;;  %v1956_v32 = vmul.f32 1.442695, %v1948_v45 }
0x1149   :  { %v1958_v29 = vmul.f32 1.442695, %v1949_v48  ;;  %v1960_v53 = vmul.f32 1.442695, %v1950_v54  ;;  %v1962_v37 = vmul.f32 1.442695, %v1951_v35 }
0x114a   :  { %2674 = vpow2.f32 %v1952_v56 }
0x114b   :  { %2676 = vpow2.f32 %v1954_v59 }
0x114c   :  { %2678 = vpow2.f32 %v1956_v32 }
0x114d   :  { %2680 = vpow2.f32 %v1958_v29 }
0x114e   :  { %2682 = vpow2.f32 %v1960_v53 }
0x114f   :  { %2684 = vpow2.f32 %v1962_v37 }
0x1157   :  { %v2675_v47 = vpop.eup %2674 }
0x1158   :  { %v2677_v51 = vpop.eup %2676  ;;  %v1964_v49 = vmul.f32 %v2675_v47, %v1507_v28 }
0x1159   :  { %v2679_v50 = vpop.eup %2678  ;;  %v1965_v39 = vadd.f32 %v2677_v51, %v2675_v47  ;;  %v1966_v43 = vmul.f32 %v2677_v51, %v1508_v30 }
0x115a   :  { %v2681_v44 = vpop.eup %2680  ;;  %v1969_v63 = vmul.f32 %v2679_v50, %v1509_v24 }
0x115b   :  { %v1967_v46 = vadd.f32 %v1966_v43, %v1964_v49  ;;  %v1968_v60 = vadd.f32 %v2679_v50, %v1965_v39  ;;  %v2683_v62 = vpop.eup %2682  ;;  %v1972_v2 = vmul.f32 %v2681_v44, %v1742_v25 }
0x115c   :  { %v2685_v3 = vpop.eup %2684  ;;  %v1975_v4 = vmul.f32 %v2683_v62, %v1743_v34 }
0x115d   :  { %v1970_v0 = vadd.f32 %v1969_v63, %v1967_v46  ;;  %v1971_v1 = vadd.f32 %v2681_v44, %v1968_v60  ;;  %v1978_v6 = vmul.f32 %v2685_v3, %v1744_v36 }
0x115f   :  { %v1973_v55 = vadd.f32 %v1972_v2, %v1970_v0  ;;  %v1974_v28 = vadd.f32 %v2683_v62, %v1971_v1 }
0x1161   :  { %v1976_v57 = vadd.f32 %v1975_v4, %v1973_v55  ;;  %v1977_v30 = vadd.f32 %v2685_v3, %v1974_v28 }
0x1163   :  { %v1979_v7 = vadd.f32 %v1978_v6, %v1976_v57  ;;  %2686 = vrcp.f32 %v1977_v30 }
0x1170   :  { %v2687_v52 = vpop.eup %2686 }
0x1171   :  { %v1981_v24 = vmul.f32 %v2687_v52, %v1979_v7 }
0x1173   :  { %v1982_v8 = vadd.f32 %v1981_v24, %v3134_v42  ;;  %v2253_v42 = vld [vmem:[%s3252_s2 + $0xb] ss:$0 sm:$0xff] }
0x1175   :  { %v1987_v9 = vpack.c.bf16 %v1982_v8, %v1982_v8 }
0x1177   :  { %2583 = vmatmul.mubr.msk.bf16.vlgmr.msra.gmra.mxu0 %vm375_vm3, %v1987_v9 }
0x1237   :  { %v2042_v25 = vpop.f32.mrf.mxu0 }
0x1238   :  { %v2043_v31 = vadd.f32 %v2249_v23, %v2042_v25 }
0x1239   :  { %v2584_v34 = vpop.f32.mrf.mxu0 }
0x123a   :  { %v2048_v10 = vmax.f32 %v2043_v31, 0.0 }
0x123b   :  { %v2045_v11 = vpop.f32.mrf.mxu0 }
0x123c   :  { %v2053_v33 = vpack.c.bf16 %v2048_v10, %v2048_v10 }
0x123d   :  { %v2585_v36 = vpop.f32.mrf.mxu0 }
0x123e   :  { %2591 = vmatmul.mubr.msk.bf16.vlgmr.msra.gmra.mxu1 %vm375_vm3, %v2053_v33 }
0x12fe   :  { %v2108_v12 = vpop.f32.mrf.mxu1 }
0x12ff   :  { %v2109_v13 = vadd.f32 %v2253_v42, %v2108_v12 }
0x1300   :  { %v2592_v14 = vpop.f32.mrf.mxu1 }
0x1301   :  { %2115 = vst.msk [vmem:[%s3253_s3] sm:$0xff] %vm2114_vm0, %v2109_v13 }
0x1302   :  { %v2111_v15 = vpop.f32.mrf.mxu1 }
0x1304   :  { %v2593_v17 = vpop.f32.mrf.mxu1 }

</bundles_post_ra>
